<compile_context>
chip_gen: v7x
topology: tpu7x:2x2x1
jax: 0.10.0
libtpu: 0.0.40
codegen_flags: <defaults>
</compile_context>

<pallas_src>
import functools

import jax
import jax.numpy as jnp
from jax.experimental import pallas as pl
from jax.experimental.pallas import tpu as pltpu

LN_EPS = 1e-5          # PyTorch nn.LayerNorm default
EMBED_DIM = 32         # backbone output width
PAD_CLASSES = 128      # lane-dense padded class axis


def _round_up(x, m):
    return (x + m - 1) // m * m


# ------------------------------ fused kernel --------------------------------
def protonet_kernel(x_ref, labels_ref,
                    w1_ref, w2_ref, w3_ref, w4_ref,
                    p512_ref, p128_ref,
                    scores_ref, *, n_support):
    def linear(h, w_ref, b):
        # bf16 x bf16 MXU matmul, f32 accumulation, f32 bias.
        return jnp.dot(h.astype(jnp.bfloat16), w_ref[...],
                       preferred_element_type=jnp.float32) + b

    def layernorm(h, g, be):
        # single-pass: E[h] and E[h^2] together, both lane-reductions can
        # issue back-to-back on the XLU.
        mu = jnp.mean(h, axis=-1, keepdims=True)
        ms = jnp.mean(h * h, axis=-1, keepdims=True)
        var = jnp.maximum(ms - mu * mu, 0.0)
        return (h - mu) * jax.lax.rsqrt(var + LN_EPS) * g + be

    # unpack the packed parameter slabs (static row slices, zero-cost views)
    b1, g1, be1 = p512_ref[0:1, :], p512_ref[1:2, :], p512_ref[2:3, :]
    b2, g2, be2 = p512_ref[3:4, :], p512_ref[4:5, :], p512_ref[5:6, :]
    b3, g3, be3 = p128_ref[0:1, :], p128_ref[1:2, :], p128_ref[2:3, :]
    b4 = p128_ref[3:4, :][:, :EMBED_DIM]

    # ----- backbone on the concatenated (support ++ query) rows (bf16 in) ---
    h = x_ref[...]                                            # (total, 768) bf16
    h = jnp.maximum(layernorm(linear(h, w1_ref, b1), g1, be1), 0.0)
    h = jnp.maximum(layernorm(linear(h, w2_ref, b2), g2, be2), 0.0)
    h = jnp.maximum(layernorm(linear(h, w3_ref, b3), g3, be3), 0.0)
    z = linear(h, w4_ref, b4)                                 # (total, 32) f32

    zs = z[:n_support, :]                                     # (S_pad, 32)
    zq = z[n_support:, :]                                     # (Q_pad, 32)

    # ----- prototypes (transposed, lane-dense) from int32 labels ------------
    labels = labels_ref[...]                                  # (S_pad, 1) int32
    class_ids = jax.lax.broadcasted_iota(
        jnp.int32, (n_support, PAD_CLASSES), 1)               # lanes = class id
    onehot = (labels == class_ids).astype(jnp.float32)        # (S_pad, 128)
    counts = jnp.sum(onehot, axis=0, keepdims=True)           # (1, 128) sublane reduce
    # protoT[d, c] = sum_s zs[s, d] * onehot[s, c]  -> (32, 128)
    protoT = jax.lax.dot_general(zs, onehot, (((0,), (0,)), ((), ())),
                                 preferred_element_type=jnp.float32)
    inv_counts = pl.reciprocal(jnp.maximum(counts, 1.0))      # exact, (1, 128)
    protoT = protoT * inv_counts                              # pad classes stay 0

    # ----- scores = -||zq - proto|| via Gram expansion -----------------------
    qq = jnp.sum(zq * zq, axis=-1, keepdims=True)             # (Q_pad, 1)
    pp = jnp.sum(protoT * protoT, axis=0, keepdims=True)      # (1, 128)
    cross = jnp.dot(zq, protoT,
                    preferred_element_type=jnp.float32)       # (Q_pad, 128)
    d2 = jnp.maximum(qq + pp - 2.0 * cross, 0.0)              # clamp: no sqrt(neg)
    scores_ref[...] = -jnp.sqrt(d2)                           # lane-dense store


# ------------------------------ pallas wrapper -------------------------------
def run_protonet(x, labels, params):
    """x: (E, total, 768) bf16; labels: (E, s_pad, 1) int32 (pad rows = -1)."""
    E, total, feat = x.shape
    s_pad = labels.shape[1]
    q_pad = total - s_pad
    w1, w2, w3, w4, p512, p128 = params

    def resident(arr):  # whole array, same block every grid step -> VMEM-resident
        return pl.BlockSpec(arr.shape, lambda e: (0,) * arr.ndim)

    return pl.pallas_call(
        functools.partial(protonet_kernel, n_support=s_pad),
        out_shape=jax.ShapeDtypeStruct((E, q_pad, PAD_CLASSES), jnp.float32),
        grid=(E,),
        in_specs=[
            pl.BlockSpec((pl.Squeezed(), total, feat), lambda e: (e, 0, 0)),
            pl.BlockSpec((pl.Squeezed(), s_pad, 1), lambda e: (e, 0, 0)),
            resident(w1), resident(w2), resident(w3), resident(w4),
            resident(p512), resident(p128),
        ],
        out_specs=pl.BlockSpec((pl.Squeezed(), q_pad, PAD_CLASSES),
                               lambda e: (e, 0, 0)),
        compiler_params=pltpu.CompilerParams(
            dimension_semantics=("parallel",)),   # shards episodes across TCs (v7x)
    )(x, labels, w1, w2, w3, w4, p512, p128)


# ------------------------------ parameter init ------------------------------
def init_params(key):
    """Learner_protoNet parameters (PyTorch-like uniform init).

    Weights stored transposed [in, out] in bf16. Biases / LayerNorm affine
    params stay f32, packed into two slabs:
      p512 (6, 512): [b1, g1, be1, b2, g2, be2]
      p128 (4, 128): [b3, g3, be3, b4 (lanes 0..31, rest 0)]
    """
    dims = [(768, 512), (512, 512), (512, 128), (128, 32)]
    keys = jax.random.split(key, 2 * len(dims))
    ws, bs = [], []
    for i, (fan_in, fan_out) in enumerate(dims):
        bound = 1.0 / (fan_in ** 0.5)
        ws.append(jax.random.uniform(keys[2 * i], (fan_in, fan_out),
                                     jnp.float32, -bound, bound).astype(jnp.bfloat16))
        bs.append(jax.random.uniform(keys[2 * i + 1], (fan_out,),
                                     jnp.float32, -bound, bound))
    gammas = [jnp.ones((d,), jnp.float32) for d in (512, 512, 128)]
    betas = [jnp.zeros((d,), jnp.float32) for d in (512, 512, 128)]
    p512 = jnp.stack([bs[0], gammas[0], betas[0],
                      bs[1], gammas[1], betas[1]], axis=0)            # (6, 512)
    b4_padded = jnp.zeros((PAD_CLASSES,), jnp.float32).at[:EMBED_DIM].set(bs[3])
    p128 = jnp.stack([bs[2], gammas[2], betas[2], b4_padded], axis=0)  # (4, 128)
    return [ws[0], ws[1], ws[2], ws[3], p512, p128]


# -------------------------------- ProtoNet ----------------------------------
def protonet_forward_episodes(support_features, support_labels, query_features,
                              params, n_way):
    """Batched-episode path: one pallas_call, weights DMA'd once.

    support_features: (E, S, 768), support_labels: (E, S), query_features: (E, Q, 768).
    Labels must lie in [0, n_way) with n_way <= 128.
    """
    assert n_way <= PAD_CLASSES
    E, n_support, _ = support_features.shape
    n_query = query_features.shape[1]
    s_pad = _round_up(n_support, 8)
    q_pad = _round_up(n_query, 8)

    xs = jnp.pad(support_features.astype(jnp.bfloat16),
                 ((0, 0), (0, s_pad - n_support), (0, 0)))
    xq = jnp.pad(query_features.astype(jnp.bfloat16),
                 ((0, 0), (0, q_pad - n_query), (0, 0)))
    x = jnp.concatenate([xs, xq], axis=1)                     # (E, s_pad+q_pad, 768)
    labels = jnp.pad(support_labels.astype(jnp.int32),
                     ((0, 0), (0, s_pad - n_support)),
                     constant_values=-1)[..., None]           # (E, s_pad, 1)

    scores = run_protonet(x, labels, params)                  # (E, q_pad, 128)
    return scores[:, :n_query, :n_way]                        # -cdist(z_query, z_proto)


def protonet_forward(support_features, support_labels, query_features, params,
                     n_way=None):
    if n_way is None:
        # requires concrete labels (do not wrap this path in jax.jit);
        # pass n_way explicitly for a jit-safe call.
        n_way = int(jnp.unique(support_labels).shape[0])
    return protonet_forward_episodes(support_features[None], support_labels[None],
                                     query_features[None], params, n_way)[0]


# --------------------------- pure-JAX reference ------------------------------
def reference_forward(support_features, support_labels, query_features, params,
                      n_way):
    w1, w2, w3, w4, p512, p128 = params
    layers = [
        (w1, p512[0:1], p512[1:2], p512[2:3]),
        (w2, p512[3:4], p512[4:5], p512[5:6]),
        (w3, p128[0:1], p128[1:2], p128[2:3]),
        (w4, p128[3:4, :EMBED_DIM], None, None),
    ]

    def backbone(x):
        h = x
        for w, b, g, be in layers:
            h = jnp.dot(h.astype(jnp.bfloat16), w,
                        preferred_element_type=jnp.float32) + b
            if g is not None:
                mu = jnp.mean(h, axis=-1, keepdims=True)
                var = jnp.mean((h - mu) ** 2, axis=-1, keepdims=True)
                h = (h - mu) * jax.lax.rsqrt(var + LN_EPS) * g + be
                h = jnp.maximum(h, 0.0)
        return h

    zs = backbone(support_features)
    zq = backbone(query_features)
    proto = jnp.stack([zs[support_labels == c].mean(axis=0)
                       for c in range(n_way)])
    d = jnp.sqrt(jnp.sum((zq[:, None, :] - proto[None, :, :]) ** 2, axis=-1))
    return -d


if __name__ == "__main__":
    key = jax.random.PRNGKey(0)
    k_params, k_sup, k_qry, k_sup2, k_qry2 = jax.random.split(key, 5)

    params = init_params(k_params)

    n_way, k_shot, n_query = 4, 2, 8
    sup = jax.random.normal(k_sup, (n_way * k_shot, 768), jnp.float32)
    sup_labels = jnp.repeat(jnp.arange(n_way, dtype=jnp.int32), k_shot)
    qry = jax.random.normal(k_qry, (n_query, 768), jnp.float32)

    # single-episode forward (matches the PyTorch module's forward)
    scores = protonet_forward(sup, sup_labels, qry, params, n_way=n_way)
    jax.block_until_ready(scores)
    assert scores.shape == (n_query, n_way)
    ref = reference_forward(sup, sup_labels, qry, params, n_way)
    assert jnp.allclose(scores, ref, atol=5e-2, rtol=5e-2), (
        float(jnp.max(jnp.abs(scores - ref))))

    # batched multi-episode path: weights loaded once, grid parallel across TCs
    sup2 = jax.random.normal(k_sup2, (n_way * k_shot, 768), jnp.float32)
    qry2 = jax.random.normal(k_qry2, (n_query, 768), jnp.float32)
    scores_b = protonet_forward_episodes(
        jnp.stack([sup, sup2]), jnp.stack([sup_labels, sup_labels]),
        jnp.stack([qry, qry2]), params, n_way=n_way)
    jax.block_until_ready(scores_b)
    ref2 = reference_forward(sup2, sup_labels, qry2, params, n_way)
    assert jnp.allclose(scores_b[0], ref, atol=5e-2, rtol=5e-2)
    assert jnp.allclose(scores_b[1], ref2, atol=5e-2, rtol=5e-2)

    print("KERNEL_OK")
</pallas_src>

<mosaic_0001>
module attributes {stable_mosaic.version = 11 : i64} {
  func.func @protonet_kernel(%arg0: i32, %arg1: memref<1x16x768xbf16, #tpu.memory_space<vmem>>, %arg2: memref<1x8x1xi32, #tpu.memory_space<vmem>>, %arg3: memref<768x512xbf16, #tpu.memory_space<vmem>>, %arg4: memref<512x512xbf16, #tpu.memory_space<vmem>>, %arg5: memref<512x128xbf16, #tpu.memory_space<vmem>>, %arg6: memref<128x32xbf16, #tpu.memory_space<vmem>>, %arg7: memref<6x512xf32, #tpu.memory_space<vmem>>, %arg8: memref<4x128xf32, #tpu.memory_space<vmem>>, %arg9: memref<1x8x128xf32, #tpu.memory_space<vmem>>) attributes {dimension_semantics = [#tpu.dimension_semantics<parallel>], iteration_bounds = array<i64: 1>, scalar_prefetch = 0 : i64, scratch_operands = 0 : i64, tpu.core_type = #tpu.core_type<tc>, window_params = [{transform_indices = @transform_0, window_bounds = array<i64: 1, 16, 768>}, {transform_indices = @transform_1, window_bounds = array<i64: 1, 8, 1>}, {pipeline_mode = #tpu.pipeline_mode<synchronous>, transform_indices = @transform_2, window_bounds = array<i64: 768, 512>}, {pipeline_mode = #tpu.pipeline_mode<synchronous>, transform_indices = @transform_3, window_bounds = array<i64: 512, 512>}, {pipeline_mode = #tpu.pipeline_mode<synchronous>, transform_indices = @transform_4, window_bounds = array<i64: 512, 128>}, {pipeline_mode = #tpu.pipeline_mode<synchronous>, transform_indices = @transform_5, window_bounds = array<i64: 128, 32>}, {pipeline_mode = #tpu.pipeline_mode<synchronous>, transform_indices = @transform_6, window_bounds = array<i64: 6, 512>}, {pipeline_mode = #tpu.pipeline_mode<synchronous>, transform_indices = @transform_7, window_bounds = array<i64: 4, 128>}, {transform_indices = @transform_8, window_bounds = array<i64: 1, 8, 128>}]} {
    %c0 = arith.constant 0 : index
    %c0_0 = arith.constant 0 : index
    %0 = vector.load %arg7[%c0, %c0_0] : memref<6x512xf32, #tpu.memory_space<vmem>>, vector<1x512xf32>
    %c1 = arith.constant 1 : index
    %c0_1 = arith.constant 0 : index
    %1 = vector.load %arg7[%c1, %c0_1] : memref<6x512xf32, #tpu.memory_space<vmem>>, vector<1x512xf32>
    %c2 = arith.constant 2 : index
    %c0_2 = arith.constant 0 : index
    %2 = vector.load %arg7[%c2, %c0_2] : memref<6x512xf32, #tpu.memory_space<vmem>>, vector<1x512xf32>
    %c3 = arith.constant 3 : index
    %c0_3 = arith.constant 0 : index
    %3 = vector.load %arg7[%c3, %c0_3] : memref<6x512xf32, #tpu.memory_space<vmem>>, vector<1x512xf32>
    %c4 = arith.constant 4 : index
    %c0_4 = arith.constant 0 : index
    %4 = vector.load %arg7[%c4, %c0_4] : memref<6x512xf32, #tpu.memory_space<vmem>>, vector<1x512xf32>
    %c5 = arith.constant 5 : index
    %c0_5 = arith.constant 0 : index
    %5 = vector.load %arg7[%c5, %c0_5] : memref<6x512xf32, #tpu.memory_space<vmem>>, vector<1x512xf32>
    %c0_6 = arith.constant 0 : index
    %c0_7 = arith.constant 0 : index
    %6 = vector.load %arg8[%c0_6, %c0_7] : memref<4x128xf32, #tpu.memory_space<vmem>>, vector<1x128xf32>
    %c1_8 = arith.constant 1 : index
    %c0_9 = arith.constant 0 : index
    %7 = vector.load %arg8[%c1_8, %c0_9] : memref<4x128xf32, #tpu.memory_space<vmem>>, vector<1x128xf32>
    %c2_10 = arith.constant 2 : index
    %c0_11 = arith.constant 0 : index
    %8 = vector.load %arg8[%c2_10, %c0_11] : memref<4x128xf32, #tpu.memory_space<vmem>>, vector<1x128xf32>
    %c3_12 = arith.constant 3 : index
    %c0_13 = arith.constant 0 : index
    %9 = vector.load %arg8[%c3_12, %c0_13] : memref<4x128xf32, #tpu.memory_space<vmem>>, vector<1x128xf32>
    %10 = vector.extract_strided_slice %9 {offsets = [0, 0], sizes = [1, 32], strides = [1, 1]} : vector<1x128xf32> to vector<1x32xf32>
    %c0_14 = arith.constant 0 : index
    %c0_15 = arith.constant 0 : index
    %c0_16 = arith.constant 0 : index
    %11 = vector.load %arg1[%c0_14, %c0_15, %c0_16] : memref<1x16x768xbf16, #tpu.memory_space<vmem>>, vector<1x16x768xbf16>
    %12 = vector.shape_cast %11 : vector<1x16x768xbf16> to vector<16x768xbf16>
    %c0_17 = arith.constant 0 : index
    %c0_18 = arith.constant 0 : index
    %13 = vector.load %arg3[%c0_17, %c0_18] : memref<768x512xbf16, #tpu.memory_space<vmem>>, vector<768x512xbf16>
    %cst = arith.constant dense<0.000000e+00> : vector<16x512xf32>
    %14 = tpu.matmul %12, %13, %cst {dimension_numbers = #tpu.dot_dimension_numbers<[1], [0], [0], [1], [0, 0, 1, 1], [], []>} : vector<16x768xbf16>, vector<768x512xbf16>, vector<16x512xf32> -> vector<16x512xf32>
    %15 = vector.broadcast %0 : vector<1x512xf32> to vector<16x512xf32>
    %16 = arith.addf %14, %15 : vector<16x512xf32>
    %cst_19 = arith.constant dense<0.000000e+00> : vector<16xf32>
    %17 = vector.multi_reduction <add>, %16, %cst_19 [1] : vector<16x512xf32> to vector<16xf32>
    %18 = vector.shape_cast %17 : vector<16xf32> to vector<16x1xf32>
    %cst_20 = arith.constant 5.120000e+02 : f32
    %19 = vector.broadcast %cst_20 : f32 to vector<16x1xf32>
    %20 = arith.divf %18, %19 : vector<16x1xf32>
    %21 = arith.mulf %16, %16 : vector<16x512xf32>
    %cst_21 = arith.constant dense<0.000000e+00> : vector<16xf32>
    %22 = vector.multi_reduction <add>, %21, %cst_21 [1] : vector<16x512xf32> to vector<16xf32>
    %23 = vector.shape_cast %22 : vector<16xf32> to vector<16x1xf32>
    %cst_22 = arith.constant 5.120000e+02 : f32
    %24 = vector.broadcast %cst_22 : f32 to vector<16x1xf32>
    %25 = arith.divf %23, %24 : vector<16x1xf32>
    %26 = arith.mulf %20, %20 : vector<16x1xf32>
    %27 = arith.subf %25, %26 : vector<16x1xf32>
    %cst_23 = arith.constant 0.000000e+00 : f32
    %28 = vector.broadcast %cst_23 : f32 to vector<16x1xf32>
    %29 = arith.maximumf %27, %28 : vector<16x1xf32>
    %30 = vector.broadcast %20 : vector<16x1xf32> to vector<16x512xf32>
    %31 = arith.subf %16, %30 : vector<16x512xf32>
    %cst_24 = arith.constant 9.99999974E-6 : f32
    %32 = vector.broadcast %cst_24 : f32 to vector<16x1xf32>
    %33 = arith.addf %29, %32 : vector<16x1xf32>
    %34 = math.rsqrt %33 : vector<16x1xf32>
    %35 = vector.broadcast %34 : vector<16x1xf32> to vector<16x512xf32>
    %36 = arith.mulf %31, %35 : vector<16x512xf32>
    %37 = vector.broadcast %1 : vector<1x512xf32> to vector<16x512xf32>
    %38 = arith.mulf %36, %37 : vector<16x512xf32>
    %39 = vector.broadcast %2 : vector<1x512xf32> to vector<16x512xf32>
    %40 = arith.addf %38, %39 : vector<16x512xf32>
    %cst_25 = arith.constant 0.000000e+00 : f32
    %41 = vector.broadcast %cst_25 : f32 to vector<16x512xf32>
    %42 = arith.maximumf %40, %41 : vector<16x512xf32>
    %43 = arith.truncf %42 : vector<16x512xf32> to vector<16x512xbf16>
    %c0_26 = arith.constant 0 : index
    %c0_27 = arith.constant 0 : index
    %44 = vector.load %arg4[%c0_26, %c0_27] : memref<512x512xbf16, #tpu.memory_space<vmem>>, vector<512x512xbf16>
    %cst_28 = arith.constant dense<0.000000e+00> : vector<16x512xf32>
    %45 = tpu.matmul %43, %44, %cst_28 {dimension_numbers = #tpu.dot_dimension_numbers<[1], [0], [0], [1], [0, 0, 1, 1], [], []>} : vector<16x512xbf16>, vector<512x512xbf16>, vector<16x512xf32> -> vector<16x512xf32>
    %46 = vector.broadcast %3 : vector<1x512xf32> to vector<16x512xf32>
    %47 = arith.addf %45, %46 : vector<16x512xf32>
    %cst_29 = arith.constant dense<0.000000e+00> : vector<16xf32>
    %48 = vector.multi_reduction <add>, %47, %cst_29 [1] : vector<16x512xf32> to vector<16xf32>
    %49 = vector.shape_cast %48 : vector<16xf32> to vector<16x1xf32>
    %cst_30 = arith.constant 5.120000e+02 : f32
    %50 = vector.broadcast %cst_30 : f32 to vector<16x1xf32>
    %51 = arith.divf %49, %50 : vector<16x1xf32>
    %52 = arith.mulf %47, %47 : vector<16x512xf32>
    %cst_31 = arith.constant dense<0.000000e+00> : vector<16xf32>
    %53 = vector.multi_reduction <add>, %52, %cst_31 [1] : vector<16x512xf32> to vector<16xf32>
    %54 = vector.shape_cast %53 : vector<16xf32> to vector<16x1xf32>
    %cst_32 = arith.constant 5.120000e+02 : f32
    %55 = vector.broadcast %cst_32 : f32 to vector<16x1xf32>
    %56 = arith.divf %54, %55 : vector<16x1xf32>
    %57 = arith.mulf %51, %51 : vector<16x1xf32>
    %58 = arith.subf %56, %57 : vector<16x1xf32>
    %cst_33 = arith.constant 0.000000e+00 : f32
    %59 = vector.broadcast %cst_33 : f32 to vector<16x1xf32>
    %60 = arith.maximumf %58, %59 : vector<16x1xf32>
    %61 = vector.broadcast %51 : vector<16x1xf32> to vector<16x512xf32>
    %62 = arith.subf %47, %61 : vector<16x512xf32>
    %cst_34 = arith.constant 9.99999974E-6 : f32
    %63 = vector.broadcast %cst_34 : f32 to vector<16x1xf32>
    %64 = arith.addf %60, %63 : vector<16x1xf32>
    %65 = math.rsqrt %64 : vector<16x1xf32>
    %66 = vector.broadcast %65 : vector<16x1xf32> to vector<16x512xf32>
    %67 = arith.mulf %62, %66 : vector<16x512xf32>
    %68 = vector.broadcast %4 : vector<1x512xf32> to vector<16x512xf32>
    %69 = arith.mulf %67, %68 : vector<16x512xf32>
    %70 = vector.broadcast %5 : vector<1x512xf32> to vector<16x512xf32>
    %71 = arith.addf %69, %70 : vector<16x512xf32>
    %cst_35 = arith.constant 0.000000e+00 : f32
    %72 = vector.broadcast %cst_35 : f32 to vector<16x512xf32>
    %73 = arith.maximumf %71, %72 : vector<16x512xf32>
    %74 = arith.truncf %73 : vector<16x512xf32> to vector<16x512xbf16>
    %c0_36 = arith.constant 0 : index
    %c0_37 = arith.constant 0 : index
    %75 = vector.load %arg5[%c0_36, %c0_37] : memref<512x128xbf16, #tpu.memory_space<vmem>>, vector<512x128xbf16>
    %cst_38 = arith.constant dense<0.000000e+00> : vector<16x128xf32>
    %76 = tpu.matmul %74, %75, %cst_38 {dimension_numbers = #tpu.dot_dimension_numbers<[1], [0], [0], [1], [0, 0, 1, 1], [], []>} : vector<16x512xbf16>, vector<512x128xbf16>, vector<16x128xf32> -> vector<16x128xf32>
    %77 = vector.broadcast %6 : vector<1x128xf32> to vector<16x128xf32>
    %78 = arith.addf %76, %77 : vector<16x128xf32>
    %cst_39 = arith.constant dense<0.000000e+00> : vector<16xf32>
    %79 = vector.multi_reduction <add>, %78, %cst_39 [1] : vector<16x128xf32> to vector<16xf32>
    %80 = vector.shape_cast %79 : vector<16xf32> to vector<16x1xf32>
    %cst_40 = arith.constant 1.280000e+02 : f32
    %81 = vector.broadcast %cst_40 : f32 to vector<16x1xf32>
    %82 = arith.divf %80, %81 : vector<16x1xf32>
    %83 = arith.mulf %78, %78 : vector<16x128xf32>
    %cst_41 = arith.constant dense<0.000000e+00> : vector<16xf32>
    %84 = vector.multi_reduction <add>, %83, %cst_41 [1] : vector<16x128xf32> to vector<16xf32>
    %85 = vector.shape_cast %84 : vector<16xf32> to vector<16x1xf32>
    %cst_42 = arith.constant 1.280000e+02 : f32
    %86 = vector.broadcast %cst_42 : f32 to vector<16x1xf32>
    %87 = arith.divf %85, %86 : vector<16x1xf32>
    %88 = arith.mulf %82, %82 : vector<16x1xf32>
    %89 = arith.subf %87, %88 : vector<16x1xf32>
    %cst_43 = arith.constant 0.000000e+00 : f32
    %90 = vector.broadcast %cst_43 : f32 to vector<16x1xf32>
    %91 = arith.maximumf %89, %90 : vector<16x1xf32>
    %92 = vector.broadcast %82 : vector<16x1xf32> to vector<16x128xf32>
    %93 = arith.subf %78, %92 : vector<16x128xf32>
    %cst_44 = arith.constant 9.99999974E-6 : f32
    %94 = vector.broadcast %cst_44 : f32 to vector<16x1xf32>
    %95 = arith.addf %91, %94 : vector<16x1xf32>
    %96 = math.rsqrt %95 : vector<16x1xf32>
    %97 = vector.broadcast %96 : vector<16x1xf32> to vector<16x128xf32>
    %98 = arith.mulf %93, %97 : vector<16x128xf32>
    %99 = vector.broadcast %7 : vector<1x128xf32> to vector<16x128xf32>
    %100 = arith.mulf %98, %99 : vector<16x128xf32>
    %101 = vector.broadcast %8 : vector<1x128xf32> to vector<16x128xf32>
    %102 = arith.addf %100, %101 : vector<16x128xf32>
    %cst_45 = arith.constant 0.000000e+00 : f32
    %103 = vector.broadcast %cst_45 : f32 to vector<16x128xf32>
    %104 = arith.maximumf %102, %103 : vector<16x128xf32>
    %105 = arith.truncf %104 : vector<16x128xf32> to vector<16x128xbf16>
    %c0_46 = arith.constant 0 : index
    %c0_47 = arith.constant 0 : index
    %106 = vector.load %arg6[%c0_46, %c0_47] : memref<128x32xbf16, #tpu.memory_space<vmem>>, vector<128x32xbf16>
    %cst_48 = arith.constant dense<0.000000e+00> : vector<16x32xf32>
    %107 = tpu.matmul %105, %106, %cst_48 {dimension_numbers = #tpu.dot_dimension_numbers<[1], [0], [0], [1], [0, 0, 1, 1], [], []>} : vector<16x128xbf16>, vector<128x32xbf16>, vector<16x32xf32> -> vector<16x32xf32>
    %108 = vector.broadcast %10 : vector<1x32xf32> to vector<16x32xf32>
    %109 = arith.addf %107, %108 : vector<16x32xf32>
    %110 = vector.extract_strided_slice %109 {offsets = [0, 0], sizes = [8, 32], strides = [1, 1]} : vector<16x32xf32> to vector<8x32xf32>
    %111 = vector.extract_strided_slice %109 {offsets = [8, 0], sizes = [8, 32], strides = [1, 1]} : vector<16x32xf32> to vector<8x32xf32>
    %c0_49 = arith.constant 0 : index
    %c0_50 = arith.constant 0 : index
    %c0_51 = arith.constant 0 : index
    %112 = vector.load %arg2[%c0_49, %c0_50, %c0_51] : memref<1x8x1xi32, #tpu.memory_space<vmem>>, vector<1x8x1xi32>
    %113 = vector.shape_cast %112 : vector<1x8x1xi32> to vector<8x1xi32>
    %114 = tpu.iota {dimensions = array<i32: 1>} : vector<8x128xi32>
    %115 = vector.broadcast %113 : vector<8x1xi32> to vector<8x128xi32>
    %116 = arith.cmpi eq, %115, %114 : vector<8x128xi32>
    %117 = arith.extui %116 : vector<8x128xi1> to vector<8x128xi32>
    %118 = arith.sitofp %117 : vector<8x128xi32> to vector<8x128xf32>
    %cst_52 = arith.constant dense<0.000000e+00> : vector<128xf32>
    %119 = vector.multi_reduction <add>, %118, %cst_52 [0] : vector<8x128xf32> to vector<128xf32>
    %120 = vector.shape_cast %119 : vector<128xf32> to vector<1x128xf32>
    %cst_53 = arith.constant dense<0.000000e+00> : vector<32x128xf32>
    %121 = tpu.matmul %110, %118, %cst_53 {dimension_numbers = #tpu.dot_dimension_numbers<[0], [0], [1], [1], [0, 1, 1, 1], [], []>} : vector<8x32xf32>, vector<8x128xf32>, vector<32x128xf32> -> vector<32x128xf32>
    %cst_54 = arith.constant 1.000000e+00 : f32
    %122 = vector.broadcast %cst_54 : f32 to vector<1x128xf32>
    %123 = arith.maximumf %120, %122 : vector<1x128xf32>
    %124 = tpu.reciprocal %123 : vector<1x128xf32> -> vector<1x128xf32>
    %125 = vector.broadcast %124 : vector<1x128xf32> to vector<32x128xf32>
    %126 = arith.mulf %121, %125 : vector<32x128xf32>
    %127 = arith.mulf %111, %111 : vector<8x32xf32>
    %cst_55 = arith.constant dense<0.000000e+00> : vector<8xf32>
    %128 = vector.multi_reduction <add>, %127, %cst_55 [1] : vector<8x32xf32> to vector<8xf32>
    %129 = vector.shape_cast %128 : vector<8xf32> to vector<8x1xf32>
    %130 = arith.mulf %126, %126 : vector<32x128xf32>
    %cst_56 = arith.constant dense<0.000000e+00> : vector<128xf32>
    %131 = vector.multi_reduction <add>, %130, %cst_56 [0] : vector<32x128xf32> to vector<128xf32>
    %132 = vector.shape_cast %131 : vector<128xf32> to vector<1x128xf32>
    %cst_57 = arith.constant dense<0.000000e+00> : vector<8x128xf32>
    %133 = tpu.matmul %111, %126, %cst_57 {dimension_numbers = #tpu.dot_dimension_numbers<[1], [0], [0], [1], [0, 0, 1, 1], [], []>} : vector<8x32xf32>, vector<32x128xf32>, vector<8x128xf32> -> vector<8x128xf32>
    %134 = vector.broadcast %129 : vector<8x1xf32> to vector<8x128xf32>
    %135 = vector.broadcast %132 : vector<1x128xf32> to vector<8x128xf32>
    %136 = arith.addf %134, %135 : vector<8x128xf32>
    %cst_58 = arith.constant 2.000000e+00 : f32
    %137 = vector.broadcast %cst_58 : f32 to vector<8x128xf32>
    %138 = arith.mulf %137, %133 : vector<8x128xf32>
    %139 = arith.subf %136, %138 : vector<8x128xf32>
    %cst_59 = arith.constant 0.000000e+00 : f32
    %140 = vector.broadcast %cst_59 : f32 to vector<8x128xf32>
    %141 = arith.maximumf %139, %140 : vector<8x128xf32>
    %142 = math.sqrt %141 : vector<8x128xf32>
    %cst_60 = arith.constant 0.000000e+00 : f32
    %143 = vector.broadcast %cst_60 : f32 to vector<8x128xf32>
    %144 = arith.subf %143, %142 : vector<8x128xf32>
    %c0_61 = arith.constant 0 : index
    %c0_62 = arith.constant 0 : index
    %c0_63 = arith.constant 0 : index
    %145 = vector.load %arg9[%c0_61, %c0_62, %c0_63] : memref<1x8x128xf32, #tpu.memory_space<vmem>>, vector<1x8x128xf32>
    %146 = vector.shape_cast %145 : vector<1x8x128xf32> to vector<8x128xf32>
    %147 = vector.shape_cast %144 : vector<8x128xf32> to vector<1x8x128xf32>
    tpu.vector_store %arg9[%c0_61, %c0_62, %c0_63], %147 {strides = array<i32>} : memref<1x8x128xf32, #tpu.memory_space<vmem>>, vector<1x8x128xf32>,
    return
  }
  func.func @transform_0(%arg0: i32) -> (i32, i32, i32) {
    %c0_i32 = arith.constant 0 : i32
    %c0_i32_0 = arith.constant 0 : i32
    %c0_i32_1 = arith.constant 0 : i32
    return %arg0, %c0_i32, %c0_i32_0 : i32, i32, i32
  }
  func.func @transform_1(%arg0: i32) -> (i32, i32, i32) {
    %c0_i32 = arith.constant 0 : i32
    %c0_i32_0 = arith.constant 0 : i32
    %c0_i32_1 = arith.constant 0 : i32
    return %arg0, %c0_i32, %c0_i32_0 : i32, i32, i32
  }
  func.func @transform_2(%arg0: i32) -> (i32, i32) {
    %c0_i32 = arith.constant 0 : i32
    %c0_i32_0 = arith.constant 0 : i32
    %c0_i32_1 = arith.constant 0 : i32
    return %c0_i32, %c0_i32_0 : i32, i32
  }
  func.func @transform_3(%arg0: i32) -> (i32, i32) {
    %c0_i32 = arith.constant 0 : i32
    %c0_i32_0 = arith.constant 0 : i32
    %c0_i32_1 = arith.constant 0 : i32
    return %c0_i32, %c0_i32_0 : i32, i32
  }
  func.func @transform_4(%arg0: i32) -> (i32, i32) {
    %c0_i32 = arith.constant 0 : i32
    %c0_i32_0 = arith.constant 0 : i32
    %c0_i32_1 = arith.constant 0 : i32
    return %c0_i32, %c0_i32_0 : i32, i32
  }
  func.func @transform_5(%arg0: i32) -> (i32, i32) {
    %c0_i32 = arith.constant 0 : i32
    %c0_i32_0 = arith.constant 0 : i32
    %c0_i32_1 = arith.constant 0 : i32
    return %c0_i32, %c0_i32_0 : i32, i32
  }
  func.func @transform_6(%arg0: i32) -> (i32, i32) {
    %c0_i32 = arith.constant 0 : i32
    %c0_i32_0 = arith.constant 0 : i32
    %c0_i32_1 = arith.constant 0 : i32
    return %c0_i32, %c0_i32_0 : i32, i32
  }
  func.func @transform_7(%arg0: i32) -> (i32, i32) {
    %c0_i32 = arith.constant 0 : i32
    %c0_i32_0 = arith.constant 0 : i32
    %c0_i32_1 = arith.constant 0 : i32
    return %c0_i32, %c0_i32_0 : i32, i32
  }
  func.func @transform_8(%arg0: i32) -> (i32, i32, i32) {
    %c0_i32 = arith.constant 0 : i32
    %c0_i32_0 = arith.constant 0 : i32
    %c0_i32_1 = arith.constant 0 : i32
    return %arg0, %c0_i32, %c0_i32_0 : i32, i32, i32
  }
}

</mosaic_0001>

<bundles_post_ra>
// kernel: tpu_custom_call.1
= control target key start
LH: loop header
LB: loop body
LE: loop exit
PB: predicated region body
PF: predicated region fallthrough
CT: control target
= control target key end

     0   :  { %13 = vsyncpa [#allocation3], 0  ;;  %s5073_s0 = inlined_call_operand.vmem [shape: bf16[1,16,768], index: 0, kind: input, shape index: {}]   ;;  %s5074_s1 = inlined_call_operand.vmem [shape: s32[1,8,1], index: 1, kind: input, shape index: {}]   ;;  %s5075_s2 = inlined_call_operand.hbm [shape: bf16[768,512], index: 2, kind: input, shape index: {}]   ;;  %s5076_s3 = inlined_call_operand.hbm [shape: bf16[512,512], index: 3, kind: input, shape index: {}]   ;;  %s5077_s4 = inlined_call_operand.hbm [shape: bf16[512,128], index: 4, kind: input, shape index: {}]   ;;  %s5078_s5 = inlined_call_operand.vmem [shape: bf16[128,32], index: 5, kind: input, shape index: {}]   ;;  %s5079_s6 = inlined_call_operand.vmem [shape: f32[6,512], index: 6, kind: input, shape index: {}]   ;;  %s5080_s7 = inlined_call_operand.vmem [shape: f32[4,128], index: 7, kind: input, shape index: {}]   ;;  %s5081_s8 = inlined_call_operand.hbm [shape: f32[1,8,128], index: 8, kind: output, shape index: {}]  }
   0x1   :  { %14 = vsyncpa [#allocation6], 0 }
   0x2   :  { %15 = vsyncpa [#allocation4], 0  ;;  %s4721_s27 = smov [#allocation5]   ;;  %s4722_s29 = smov [#allocation2]  }
   0x3   :  { %s37_s28 = sshll.u32 %s4721_s27, 4  ;;  %s25_s30 = sshll.u32 %s4722_s29, 4  ;;  %s38_s28 = int_to_ptr.vmem [resolvable:$true] %s37_s28  ;;  %s4779_s30 = int_to_ptr.vmem [resolvable:$true] %s25_s30 }
   0x4   :  { %s4627_s11 = scalar_lea.hbm %s5076_s3, 16384 }
   0x5   :  { %p4628_p0 = scmp.ne.s32.totalorder %s5076_s3, %s4627_s11  ;;  %p4631_p1 = scmp.lt.u32.totalorder %s4627_s11, %s5076_s3 }
   0x7   :  { %p4633_p2 = pnand %p4631_p1, %p4628_p0 }
   0x9   :  { %4636 = shalt.err (!%p4633_p2)
}
   0xa   :  { %s4637_s16 = scalar_lea.vmem %s38_s28, 16384  ;;  %p4642_p4 = scmp.lt.s32.totalorder %s38_s28, %s38_s28 }
   0xb   :  { %p4638_p3 = scmp.ne.s32.totalorder %s38_s28, %s4637_s16  ;;  %p4643_p5 = scmp.lt.s32.totalorder %s4637_s16, %s4637_s16 }
   0xd   :  { %p4644_p6 = por %p4643_p5, %p4642_p4 }
   0xf   :  { %p4645_p7 = pnand %p4644_p6, %p4638_p3 }
  0x11   :  { %4648 = shalt.err (!%p4645_p7)
}
  0x12   :  { %s4723_s17 = smov 256   ;;  %s4724_s18 = smov 16  }
  0x13   :  { %43 = dma.hbm_to_vmem [thread:$0]  %s5076_s3, 16384, %s38_s28, [#allocation6], %s4723_s17, %s4723_s17, %s4724_s18  }
  0x14   :  { %s4649_s23 = scalar_lea.hbm %s5075_s2, 24576 }
  0x15   :  { %p4650_p8 = scmp.ne.s32.totalorder %s5075_s2, %s4649_s23  ;;  %p4653_p9 = scmp.lt.u32.totalorder %s4649_s23, %s5075_s2 }
  0x17   :  { %p4655_p10 = pnand %p4653_p9, %p4650_p8 }
  0x19   :  { %4658 = shalt.err (!%p4655_p10)
}
  0x1a   :  { %s4659_s29 = scalar_lea.vmem %s4779_s30, 24576  ;;  %p4664_p12 = scmp.lt.s32.totalorder %s4779_s30, %s4779_s30 }
  0x1b   :  { %p4660_p11 = scmp.ne.s32.totalorder %s4779_s30, %s4659_s29  ;;  %p4665_p13 = scmp.lt.s32.totalorder %s4659_s29, %s4659_s29 }
  0x1d   :  { %p4666_p0 = por %p4665_p13, %p4664_p12 }
  0x1f   :  { %p4667_p1 = pnand %p4666_p0, %p4660_p11 }
  0x21   :  { %4670 = shalt.err (!%p4667_p1)
}
  0x22   :  { %31 = dma.hbm_to_vmem [thread:$0]  %s5075_s2, 24576, %s4779_s30, [#allocation3], %s4723_s17, %s4723_s17, %s4724_s18  }
  0x23   :  { %s4725_s9 = smov [#allocation7]   ;;  %s4671_s13 = scalar_lea.hbm %s5077_s4, 4096 }
  0x24   :  { %s49_s10 = sshll.u32 %s4725_s9, 4  ;;  %p4672_p2 = scmp.ne.s32.totalorder %s5077_s4, %s4671_s13  ;;  %s50_s10 = int_to_ptr.vmem [resolvable:$true] %s49_s10 }
  0x25   :  { %p4675_p3 = scmp.lt.u32.totalorder %s4671_s13, %s5077_s4 }
  0x27   :  { %p4677_p4 = pnand %p4675_p3, %p4672_p2 }
  0x29   :  { %4680 = shalt.err (!%p4677_p4)
}
  0x2a   :  { %s4681_s20 = scalar_lea.vmem %s50_s10, 4096  ;;  %p4686_p6 = scmp.lt.s32.totalorder %s50_s10, %s50_s10 }
  0x2b   :  { %p4682_p5 = scmp.ne.s32.totalorder %s50_s10, %s4681_s20  ;;  %p4687_p7 = scmp.lt.s32.totalorder %s4681_s20, %s4681_s20 }
  0x2d   :  { %p4688_p8 = por %p4687_p7, %p4686_p6 }
  0x2f   :  { %p4689_p9 = pnand %p4688_p8, %p4682_p5 }
  0x31   :  { %4692 = shalt.err (!%p4689_p9)
}
  0x32   :  { %s4726_s2 = smov 64   ;;  %s4727_s30 = smov 4  }
  0x33   :  { %55 = dma.hbm_to_vmem [thread:$0]  %s5077_s4, 4096, %s50_s10, [#allocation6], %s4726_s2, %s4726_s2, %s4727_s30  }
  0x34   :  { %4715 = dma.done.wait [#allocation3], 24576  }
  0x35   :  { %4716 = vsyncadd [#allocation3], 4294942720 }
  0x36   :  { %4717 = dma.done.wait [#allocation6], 20480  }
  0x37   :  { %4718 = vsyncadd [#allocation6], 4294946816  ;;  %v4082_v0 = vld [vmem:[#allocation2 + $0x4] ss:$16 sps:$4 sm:$0xff]   ;;  %v4084_v1 = vld [vmem:[#allocation2 + $0xc] ss:$16 sps:$4 sm:$0xff]  }
  0x38   :  { %1296 = vmatprep.subr.bf16.mxu0 %v4082_v0  ;;  %v4086_v2 = vld [vmem:[#allocation2] ss:$16 sps:$4 sm:$0xff]   ;;  %v4087_v3 = vld [vmem:[#allocation2 + $0x8] ss:$16 sps:$4 sm:$0xff]   ;;  %1425 = vmatprep.subr.bf16.mxu1 %v4084_v1  ;;  %v4088_v4 = vld [vmem:[#allocation2 + $0x24] ss:$16 sps:$4 sm:$0xff]  }
  0x39   :  { %1297 = vmatpush1.bf16.msra.mxu0 %v4086_v2  ;;  %1426 = vmatpush1.bf16.msra.mxu1 %v4087_v3  ;;  %v4090_v5 = vld [vmem:[#allocation2 + $0x2c] ss:$16 sps:$4 sm:$0xff]   ;;  %v4092_v6 = vld [vmem:[#allocation2 + $0x20] ss:$16 sps:$4 sm:$0xff]   ;;  %v4093_v7 = vld [vmem:[#allocation2 + $0x28] ss:$16 sps:$4 sm:$0xff]  }
  0x3a   :  { %1298 = vmatprep.subr.bf16.mxu0 %v4088_v4  ;;  %1427 = vmatprep.subr.bf16.mxu1 %v4090_v5  ;;  %v4094_v8 = vld [vmem:[#allocation2 + $0x44] ss:$16 sps:$4 sm:$0xff]   ;;  %v4096_v9 = vld [vmem:[#allocation2 + $0x4c] ss:$16 sps:$4 sm:$0xff]   ;;  %v4098_v10 = vld [vmem:[#allocation2 + $0x40] ss:$16 sps:$4 sm:$0xff]  }
  0x3b   :  { %v4099_v11 = vld [vmem:[#allocation2 + $0x48] ss:$16 sps:$4 sm:$0xff]   ;;  %v4100_v12 = vld [vmem:[#allocation2 + $0x64] ss:$16 sps:$4 sm:$0xff]   ;;  %v4102_v13 = vld [vmem:[#allocation2 + $0x6c] ss:$16 sps:$4 sm:$0xff]  }
  0x3c   :  { %v4104_v14 = vld [vmem:[#allocation2 + $0x60] ss:$16 sps:$4 sm:$0xff]   ;;  %v4105_v15 = vld [vmem:[#allocation2 + $0x68] ss:$16 sps:$4 sm:$0xff]   ;;  %v4106_v16 = vld [vmem:[#allocation2 + $0x84] ss:$16 sps:$4 sm:$0xff]  }
  0x3d   :  { %1299 = vmatpush1.bf16.msra.mxu0 %v4092_v6  ;;  %1428 = vmatpush1.bf16.msra.mxu1 %v4093_v7  ;;  %v4108_v17 = vld [vmem:[#allocation2 + $0x8c] ss:$16 sps:$4 sm:$0xff]   ;;  %v4110_v18 = vld [vmem:[#allocation2 + $0x80] ss:$16 sps:$4 sm:$0xff]   ;;  %v4111_v19 = vld [vmem:[#allocation2 + $0x88] ss:$16 sps:$4 sm:$0xff]  }
  0x3e   :  { %1300 = vmatprep.subr.bf16.mxu0 %v4094_v8  ;;  %1429 = vmatprep.subr.bf16.mxu1 %v4096_v9  ;;  %v4112_v20 = vld [vmem:[#allocation2 + $0xa4] ss:$16 sps:$4 sm:$0xff]   ;;  %v4114_v21 = vld [vmem:[#allocation2 + $0xac] ss:$16 sps:$4 sm:$0xff]   ;;  %v4116_v22 = vld [vmem:[#allocation2 + $0xa0] ss:$16 sps:$4 sm:$0xff]  }
  0x3f   :  { %v4117_v23 = vld [vmem:[#allocation2 + $0xa8] ss:$16 sps:$4 sm:$0xff]   ;;  %v4118_v24 = vld [vmem:[#allocation2 + $0xc4] ss:$16 sps:$4 sm:$0xff]   ;;  %v4120_v25 = vld [vmem:[#allocation2 + $0xcc] ss:$16 sps:$4 sm:$0xff]  }
  0x40   :  { %v4122_v26 = vld [vmem:[#allocation2 + $0xc0] ss:$16 sps:$4 sm:$0xff]   ;;  %v4123_v27 = vld [vmem:[#allocation2 + $0xc8] ss:$16 sps:$4 sm:$0xff]   ;;  %v4124_v28 = vld [vmem:[#allocation2 + $0xe4] ss:$16 sps:$4 sm:$0xff]  }
  0x41   :  { %1301 = vmatpush1.bf16.msra.mxu0 %v4098_v10  ;;  %1430 = vmatpush1.bf16.msra.mxu1 %v4099_v11  ;;  %v4126_v29 = vld [vmem:[#allocation2 + $0xec] ss:$16 sps:$4 sm:$0xff]   ;;  %v4128_v30 = vld [vmem:[#allocation2 + $0xe0] ss:$16 sps:$4 sm:$0xff]   ;;  %v4129_v31 = vld [vmem:[#allocation2 + $0xe8] ss:$16 sps:$4 sm:$0xff]  }
  0x42   :  { %1302 = vmatprep.subr.bf16.mxu0 %v4100_v12  ;;  %1431 = vmatprep.subr.bf16.mxu1 %v4102_v13  ;;  %v4130_v32 = vld [vmem:[#allocation2 + $0x104] ss:$16 sps:$4 sm:$0xff]   ;;  %v4132_v33 = vld [vmem:[#allocation2 + $0x10c] ss:$16 sps:$4 sm:$0xff]   ;;  %v4134_v34 = vld [vmem:[#allocation2 + $0x100] ss:$16 sps:$4 sm:$0xff]  }
  0x43   :  { %v4135_v35 = vld [vmem:[#allocation2 + $0x108] ss:$16 sps:$4 sm:$0xff]   ;;  %v4136_v36 = vld [vmem:[#allocation2 + $0x124] ss:$16 sps:$4 sm:$0xff]   ;;  %v4138_v37 = vld [vmem:[#allocation2 + $0x12c] ss:$16 sps:$4 sm:$0xff]  }
  0x44   :  { %v4140_v38 = vld [vmem:[#allocation2 + $0x120] ss:$16 sps:$4 sm:$0xff]   ;;  %v4141_v39 = vld [vmem:[#allocation2 + $0x128] ss:$16 sps:$4 sm:$0xff]   ;;  %v4142_v40 = vld [vmem:[#allocation2 + $0x144] ss:$16 sps:$4 sm:$0xff]  }
  0x45   :  { %1303 = vmatpush1.bf16.msra.mxu0 %v4104_v14  ;;  %1432 = vmatpush1.bf16.msra.mxu1 %v4105_v15  ;;  %v4144_v41 = vld [vmem:[#allocation2 + $0x14c] ss:$16 sps:$4 sm:$0xff]   ;;  %v4146_v42 = vld [vmem:[#allocation2 + $0x140] ss:$16 sps:$4 sm:$0xff]   ;;  %v4147_v43 = vld [vmem:[#allocation2 + $0x148] ss:$16 sps:$4 sm:$0xff]  }
  0x46   :  { %1304 = vmatprep.subr.bf16.mxu0 %v4106_v16  ;;  %1433 = vmatprep.subr.bf16.mxu1 %v4108_v17  ;;  %v4148_v44 = vld [vmem:[#allocation2 + $0x164] ss:$16 sps:$4 sm:$0xff]   ;;  %v4150_v45 = vld [vmem:[#allocation2 + $0x16c] ss:$16 sps:$4 sm:$0xff]   ;;  %v4152_v46 = vld [vmem:[#allocation2 + $0x160] ss:$16 sps:$4 sm:$0xff]  }
  0x47   :  { %v4153_v47 = vld [vmem:[#allocation2 + $0x168] ss:$16 sps:$4 sm:$0xff]   ;;  %v4180_v48 = vld [vmem:[%s5073_s0 + $0x4] ss:$24 sps:$4 sm:$0xff]   ;;  %v4158_v51 = vld [vmem:[#allocation2 + $0x180] ss:$16 sps:$4 sm:$0xff]  }
  0x48   :  { %v4154_v49 = vld [vmem:[#allocation2 + $0x184] ss:$16 sps:$4 sm:$0xff]   ;;  %v4156_v50 = vld [vmem:[#allocation2 + $0x18c] ss:$16 sps:$4 sm:$0xff]   ;;  %1328 = vmatprep.mubr.bf16.mxu0 %v4180_v48  ;;  %1457 = vmatprep.mubr.bf16.mxu1 %v4180_v48  ;;  %v4159_v52 = vld [vmem:[#allocation2 + $0x188] ss:$16 sps:$4 sm:$0xff]  }
  0x49   :  { %1305 = vmatpush1.bf16.msra.mxu0 %v4110_v18  ;;  %1434 = vmatpush1.bf16.msra.mxu1 %v4111_v19  ;;  %v4160_v53 = vld [vmem:[#allocation2 + $0x1a4] ss:$16 sps:$4 sm:$0xff]   ;;  %v4162_v54 = vld [vmem:[#allocation2 + $0x1ac] ss:$16 sps:$4 sm:$0xff]   ;;  %v4164_v55 = vld [vmem:[#allocation2 + $0x1a0] ss:$16 sps:$4 sm:$0xff]  }
  0x4a   :  { %1306 = vmatprep.subr.bf16.mxu0 %v4112_v20  ;;  %1435 = vmatprep.subr.bf16.mxu1 %v4114_v21  ;;  %v4165_v56 = vld [vmem:[#allocation2 + $0x1a8] ss:$16 sps:$4 sm:$0xff]   ;;  %v4166_v57 = vld [vmem:[#allocation2 + $0x1c4] ss:$16 sps:$4 sm:$0xff]   ;;  %v4168_v58 = vld [vmem:[#allocation2 + $0x1cc] ss:$16 sps:$4 sm:$0xff]  }
  0x4b   :  { %v4170_v59 = vld [vmem:[#allocation2 + $0x1c0] ss:$16 sps:$4 sm:$0xff]   ;;  %v4171_v60 = vld [vmem:[#allocation2 + $0x1c8] ss:$16 sps:$4 sm:$0xff]   ;;  %v4172_v61 = vld [vmem:[#allocation2 + $0x1e4] ss:$16 sps:$4 sm:$0xff]  }
  0x4c   :  { %v4174_v62 = vld [vmem:[#allocation2 + $0x1ec] ss:$16 sps:$4 sm:$0xff]   ;;  %v4176_v63 = vld [vmem:[#allocation2 + $0x1e0] ss:$16 sps:$4 sm:$0xff]   ;;  %v4177_v0 = vld [vmem:[#allocation2 + $0x1e8] ss:$16 sps:$4 sm:$0xff]  }
  0x4d   :  { %1307 = vmatpush1.bf16.msra.mxu0 %v4116_v22  ;;  %1436 = vmatpush1.bf16.msra.mxu1 %v4117_v23  ;;  %v4183_v1 = vld [vmem:[#allocation2 + $0x204] ss:$16 sps:$4 sm:$0xff]   ;;  %v4186_v2 = vld [vmem:[#allocation2 + $0x20c] ss:$16 sps:$4 sm:$0xff]   ;;  %v4178_v3 = vld [vmem:[%s5073_s0] ss:$24 sps:$4 sm:$0xff]  }
  0x4e   :  { %1308 = vmatprep.subr.bf16.mxu0 %v4118_v24  ;;  %1437 = vmatprep.subr.bf16.mxu1 %v4120_v25  ;;  %v4181_v4 = vld [vmem:[#allocation2 + $0x200] ss:$16 sps:$4 sm:$0xff]   ;;  %v4184_v5 = vld [vmem:[#allocation2 + $0x208] ss:$16 sps:$4 sm:$0xff]   ;;  %v4189_v6 = vld [vmem:[#allocation2 + $0x224] ss:$16 sps:$4 sm:$0xff]  }
  0x4f   :  { %v4192_v7 = vld [vmem:[#allocation2 + $0x22c] ss:$16 sps:$4 sm:$0xff]   ;;  %v4187_v8 = vld [vmem:[#allocation2 + $0x220] ss:$16 sps:$4 sm:$0xff]   ;;  %v4190_v9 = vld [vmem:[#allocation2 + $0x228] ss:$16 sps:$4 sm:$0xff]  }
  0x50   :  { %v4195_v10 = vld [vmem:[#allocation2 + $0x244] ss:$16 sps:$4 sm:$0xff]   ;;  %v4198_v11 = vld [vmem:[#allocation2 + $0x24c] ss:$16 sps:$4 sm:$0xff]   ;;  %v4193_v12 = vld [vmem:[#allocation2 + $0x240] ss:$16 sps:$4 sm:$0xff]  }
  0x51   :  { %1309 = vmatpush1.bf16.msra.mxu0 %v4122_v26  ;;  %1438 = vmatpush1.bf16.msra.mxu1 %v4123_v27  ;;  %v4196_v13 = vld [vmem:[#allocation2 + $0x248] ss:$16 sps:$4 sm:$0xff]   ;;  %v4201_v14 = vld [vmem:[#allocation2 + $0x264] ss:$16 sps:$4 sm:$0xff]   ;;  %v4204_v15 = vld [vmem:[#allocation2 + $0x26c] ss:$16 sps:$4 sm:$0xff]  }
  0x52   :  { %1310 = vmatprep.subr.bf16.mxu0 %v4124_v28  ;;  %1439 = vmatprep.subr.bf16.mxu1 %v4126_v29  ;;  %v4199_v16 = vld [vmem:[#allocation2 + $0x260] ss:$16 sps:$4 sm:$0xff]   ;;  %v4202_v17 = vld [vmem:[#allocation2 + $0x268] ss:$16 sps:$4 sm:$0xff]   ;;  %v4207_v18 = vld [vmem:[#allocation2 + $0x284] ss:$16 sps:$4 sm:$0xff]  }
  0x53   :  { %v4210_v19 = vld [vmem:[#allocation2 + $0x28c] ss:$16 sps:$4 sm:$0xff]   ;;  %v4205_v20 = vld [vmem:[#allocation2 + $0x280] ss:$16 sps:$4 sm:$0xff]   ;;  %v4208_v21 = vld [vmem:[#allocation2 + $0x288] ss:$16 sps:$4 sm:$0xff]  }
  0x54   :  { %v4213_v22 = vld [vmem:[#allocation2 + $0x2a4] ss:$16 sps:$4 sm:$0xff]   ;;  %v4216_v23 = vld [vmem:[#allocation2 + $0x2ac] ss:$16 sps:$4 sm:$0xff]   ;;  %v4211_v24 = vld [vmem:[#allocation2 + $0x2a0] ss:$16 sps:$4 sm:$0xff]  }
  0x55   :  { %1311 = vmatpush1.bf16.msra.mxu0 %v4128_v30  ;;  %1440 = vmatpush1.bf16.msra.mxu1 %v4129_v31  ;;  %v4214_v25 = vld [vmem:[#allocation2 + $0x2a8] ss:$16 sps:$4 sm:$0xff]   ;;  %v4219_v26 = vld [vmem:[#allocation2 + $0x2c4] ss:$16 sps:$4 sm:$0xff]   ;;  %v4222_v27 = vld [vmem:[#allocation2 + $0x2cc] ss:$16 sps:$4 sm:$0xff]  }
  0x56   :  { %1312 = vmatprep.subr.bf16.mxu0 %v4130_v32  ;;  %1441 = vmatprep.subr.bf16.mxu1 %v4132_v33  ;;  %v4217_v28 = vld [vmem:[#allocation2 + $0x2c0] ss:$16 sps:$4 sm:$0xff]   ;;  %v4220_v29 = vld [vmem:[#allocation2 + $0x2c8] ss:$16 sps:$4 sm:$0xff]   ;;  %v4279_v30 = vld [vmem:[%s5073_s0 + $0xc] ss:$24 sps:$4 sm:$0xff]  }
  0x57   :  { %v4225_v31 = vld [vmem:[#allocation2 + $0x2e4] ss:$16 sps:$4 sm:$0xff]   ;;  %v4228_v32 = vld [vmem:[#allocation2 + $0x2ec] ss:$16 sps:$4 sm:$0xff]   ;;  %v4223_v33 = vld [vmem:[#allocation2 + $0x2e0] ss:$16 sps:$4 sm:$0xff]  }
  0x58   :  { %v4252_v48 = vld [vmem:[#allocation2 + $0x36c] ss:$16 sps:$4 sm:$0xff]   ;;  %vm4729_vm0 = vmmov 0   ;;  %vm3419_vm2 = vcmask 261120   ;;  %vm3314_vm3 = vcmask 64512  }
  0x59   :  { %1313 = vmatpush1.bf16.msra.mxu0 %v4134_v34  ;;  %1442 = vmatpush1.bf16.msra.mxu1 %v4135_v35  ;;  %v4226_v34 = vld [vmem:[#allocation2 + $0x2e8] ss:$16 sps:$4 sm:$0xff]   ;;  %v4231_v35 = vld [vmem:[#allocation2 + $0x304] ss:$16 sps:$4 sm:$0xff]  }
  0x5a   :  { %1314 = vmatprep.subr.bf16.mxu0 %v4136_v36  ;;  %1443 = vmatprep.subr.bf16.mxu1 %v4138_v37  ;;  %v4234_v36 = vld [vmem:[#allocation2 + $0x30c] ss:$16 sps:$4 sm:$0xff]   ;;  %v4229_v37 = vld [vmem:[#allocation2 + $0x300] ss:$16 sps:$4 sm:$0xff]  }
  0x5d   :  { %1315 = vmatpush1.bf16.msra.mxu0 %v4140_v38  ;;  %1444 = vmatpush1.bf16.msra.mxu1 %v4141_v39  ;;  %v4232_v38 = vld [vmem:[#allocation2 + $0x308] ss:$16 sps:$4 sm:$0xff]   ;;  %v4237_v39 = vld [vmem:[#allocation2 + $0x324] ss:$16 sps:$4 sm:$0xff]  }
  0x5e   :  { %1316 = vmatprep.subr.bf16.mxu0 %v4142_v40  ;;  %1445 = vmatprep.subr.bf16.mxu1 %v4144_v41  ;;  %v4240_v40 = vld [vmem:[#allocation2 + $0x32c] ss:$16 sps:$4 sm:$0xff]   ;;  %v4235_v41 = vld [vmem:[#allocation2 + $0x320] ss:$16 sps:$4 sm:$0xff]  }
  0x61   :  { %1317 = vmatpush1.bf16.msra.mxu0 %v4146_v42  ;;  %1446 = vmatpush1.bf16.msra.mxu1 %v4147_v43  ;;  %v4238_v42 = vld [vmem:[#allocation2 + $0x328] ss:$16 sps:$4 sm:$0xff]   ;;  %v4243_v43 = vld [vmem:[#allocation2 + $0x344] ss:$16 sps:$4 sm:$0xff]  }
  0x62   :  { %1318 = vmatprep.subr.bf16.mxu0 %v4148_v44  ;;  %1447 = vmatprep.subr.bf16.mxu1 %v4150_v45  ;;  %v4246_v44 = vld [vmem:[#allocation2 + $0x34c] ss:$16 sps:$4 sm:$0xff]   ;;  %v4241_v45 = vld [vmem:[#allocation2 + $0x340] ss:$16 sps:$4 sm:$0xff]  }
  0x65   :  { %1319 = vmatpush1.bf16.msra.mxu0 %v4152_v46  ;;  %1448 = vmatpush1.bf16.msra.mxu1 %v4153_v47  ;;  %v4244_v46 = vld [vmem:[#allocation2 + $0x348] ss:$16 sps:$4 sm:$0xff]   ;;  %v4249_v47 = vld [vmem:[#allocation2 + $0x364] ss:$16 sps:$4 sm:$0xff]  }
  0x66   :  { %1320 = vmatprep.subr.bf16.mxu0 %v4154_v49  ;;  %1449 = vmatprep.subr.bf16.mxu1 %v4156_v50  ;;  %v4247_v49 = vld [vmem:[#allocation2 + $0x360] ss:$16 sps:$4 sm:$0xff]   ;;  %v4250_v50 = vld [vmem:[#allocation2 + $0x368] ss:$16 sps:$4 sm:$0xff]  }
  0x69   :  { %1321 = vmatpush1.bf16.msra.mxu0 %v4158_v51  ;;  %1450 = vmatpush1.bf16.msra.mxu1 %v4159_v52  ;;  %v4255_v51 = vld [vmem:[#allocation2 + $0x384] ss:$16 sps:$4 sm:$0xff]   ;;  %v4258_v52 = vld [vmem:[#allocation2 + $0x38c] ss:$16 sps:$4 sm:$0xff]  }
  0x6a   :  { %1322 = vmatprep.subr.bf16.mxu0 %v4160_v53  ;;  %1451 = vmatprep.subr.bf16.mxu1 %v4162_v54  ;;  %v4253_v53 = vld [vmem:[#allocation2 + $0x380] ss:$16 sps:$4 sm:$0xff]   ;;  %v4256_v54 = vld [vmem:[#allocation2 + $0x388] ss:$16 sps:$4 sm:$0xff]  }
  0x6d   :  { %1323 = vmatpush1.bf16.msra.mxu0 %v4164_v55  ;;  %1452 = vmatpush1.bf16.msra.mxu1 %v4165_v56  ;;  %v4261_v55 = vld [vmem:[#allocation2 + $0x3a4] ss:$16 sps:$4 sm:$0xff]   ;;  %v4264_v56 = vld [vmem:[#allocation2 + $0x3ac] ss:$16 sps:$4 sm:$0xff]  }
  0x6e   :  { %1324 = vmatprep.subr.bf16.mxu0 %v4166_v57  ;;  %1453 = vmatprep.subr.bf16.mxu1 %v4168_v58  ;;  %v4259_v57 = vld [vmem:[#allocation2 + $0x3a0] ss:$16 sps:$4 sm:$0xff]   ;;  %v4262_v58 = vld [vmem:[#allocation2 + $0x3a8] ss:$16 sps:$4 sm:$0xff]  }
  0x71   :  { %1325 = vmatpush1.bf16.msra.mxu0 %v4170_v59  ;;  %1454 = vmatpush1.bf16.msra.mxu1 %v4171_v60  ;;  %v4267_v59 = vld [vmem:[#allocation2 + $0x3c4] ss:$16 sps:$4 sm:$0xff]   ;;  %v4270_v60 = vld [vmem:[#allocation2 + $0x3cc] ss:$16 sps:$4 sm:$0xff]  }
  0x72   :  { %1326 = vmatprep.subr.bf16.mxu0 %v4172_v61  ;;  %1455 = vmatprep.subr.bf16.mxu1 %v4174_v62  ;;  %v4265_v61 = vld [vmem:[#allocation2 + $0x3c0] ss:$16 sps:$4 sm:$0xff]   ;;  %v4268_v62 = vld [vmem:[#allocation2 + $0x3c8] ss:$16 sps:$4 sm:$0xff]  }
  0x75   :  { %1327 = vmatpush1.bf16.msra.mxu0 %v4176_v63  ;;  %1456 = vmatpush1.bf16.msra.mxu1 %v4177_v0  ;;  %v4273_v63 = vld [vmem:[#allocation2 + $0x3e4] ss:$16 sps:$4 sm:$0xff]   ;;  %v4276_v0 = vld [vmem:[#allocation2 + $0x3ec] ss:$16 sps:$4 sm:$0xff]  }
  0x76   :  { %1339 = vmatprep.subr.bf16.mxu0 %v4183_v1  ;;  %1468 = vmatprep.subr.bf16.mxu1 %v4186_v2  ;;  %v4271_v1 = vld [vmem:[#allocation2 + $0x3e0] ss:$16 sps:$4 sm:$0xff]   ;;  %v4274_v2 = vld [vmem:[#allocation2 + $0x3e8] ss:$16 sps:$4 sm:$0xff]  }
  0x78   :  { %1329 = vmatmul.mubr.bf16.vlgmr.msra.gmra.mrb[0].mxu0 %v4178_v3  ;;  %1458 = vmatmul.mubr.bf16.vlgmr.msra.gmra.mrb[0].mxu1 %v4178_v3  ;;  %v4282_v3 = vld [vmem:[#allocation2 + $0x404] ss:$16 sps:$4 sm:$0xff]  }
  0x79   :  { %1340 = vmatpush1.bf16.msra.mxu0 %v4181_v4  ;;  %1469 = vmatpush1.bf16.msra.mxu1 %v4184_v5  ;;  %v4285_v4 = vld [vmem:[#allocation2 + $0x40c] ss:$16 sps:$4 sm:$0xff]   ;;  %v4277_v5 = vld [vmem:[%s5073_s0 + $0x8] ss:$24 sps:$4 sm:$0xff]  }
  0x7a   :  { %1341 = vmatprep.subr.bf16.mxu0 %v4189_v6  ;;  %1470 = vmatprep.subr.bf16.mxu1 %v4192_v7  ;;  %v4280_v6 = vld [vmem:[#allocation2 + $0x400] ss:$16 sps:$4 sm:$0xff]   ;;  %v4283_v7 = vld [vmem:[#allocation2 + $0x408] ss:$16 sps:$4 sm:$0xff]  }
  0x7b   :  { %1371 = vmatprep.mubr.bf16.mxu0 %v4279_v30  ;;  %1500 = vmatprep.mubr.bf16.mxu1 %v4279_v30  ;;  %v4321_v30 = vld [vmem:[#allocation2 + $0x4cc] ss:$16 sps:$4 sm:$0xff]  }
  0x7d   :  { %1342 = vmatpush1.bf16.msra.mxu0 %v4187_v8  ;;  %1471 = vmatpush1.bf16.msra.mxu1 %v4190_v9  ;;  %v4288_v8 = vld [vmem:[#allocation2 + $0x424] ss:$16 sps:$4 sm:$0xff]   ;;  %v4291_v9 = vld [vmem:[#allocation2 + $0x42c] ss:$16 sps:$4 sm:$0xff]  }
  0x7e   :  { %1343 = vmatprep.subr.bf16.mxu0 %v4195_v10  ;;  %1472 = vmatprep.subr.bf16.mxu1 %v4198_v11  ;;  %v4286_v10 = vld [vmem:[#allocation2 + $0x420] ss:$16 sps:$4 sm:$0xff]   ;;  %v4289_v11 = vld [vmem:[#allocation2 + $0x428] ss:$16 sps:$4 sm:$0xff]  }
  0x81   :  { %1344 = vmatpush1.bf16.msra.mxu0 %v4193_v12  ;;  %1473 = vmatpush1.bf16.msra.mxu1 %v4196_v13  ;;  %v4294_v12 = vld [vmem:[#allocation2 + $0x444] ss:$16 sps:$4 sm:$0xff]  }
  0x82   :  { %1345 = vmatprep.subr.bf16.mxu0 %v4201_v14  ;;  %1474 = vmatprep.subr.bf16.mxu1 %v4204_v15  ;;  %v4378_v13 = vld [vmem:[%s5073_s0 + $0x14] ss:$24 sps:$4 sm:$0xff]   ;;  %v4292_v15 = vld [vmem:[#allocation2 + $0x440] ss:$16 sps:$4 sm:$0xff]  }
  0x83   :  { %v4297_v14 = vld [vmem:[#allocation2 + $0x44c] ss:$16 sps:$4 sm:$0xff]  }
  0x85   :  { %1346 = vmatpush1.bf16.msra.mxu0 %v4199_v16  ;;  %1475 = vmatpush1.bf16.msra.mxu1 %v4202_v17  ;;  %v4295_v16 = vld [vmem:[#allocation2 + $0x448] ss:$16 sps:$4 sm:$0xff]   ;;  %v4300_v17 = vld [vmem:[#allocation2 + $0x464] ss:$16 sps:$4 sm:$0xff]  }
  0x86   :  { %1347 = vmatprep.subr.bf16.mxu0 %v4207_v18  ;;  %1476 = vmatprep.subr.bf16.mxu1 %v4210_v19  ;;  %v4303_v18 = vld [vmem:[#allocation2 + $0x46c] ss:$16 sps:$4 sm:$0xff]   ;;  %v4298_v19 = vld [vmem:[#allocation2 + $0x460] ss:$16 sps:$4 sm:$0xff]  }
  0x89   :  { %1348 = vmatpush1.bf16.msra.mxu0 %v4205_v20  ;;  %1477 = vmatpush1.bf16.msra.mxu1 %v4208_v21  ;;  %v4301_v20 = vld [vmem:[#allocation2 + $0x468] ss:$16 sps:$4 sm:$0xff]   ;;  %v4306_v21 = vld [vmem:[#allocation2 + $0x484] ss:$16 sps:$4 sm:$0xff]  }
  0x8a   :  { %1349 = vmatprep.subr.bf16.mxu0 %v4213_v22  ;;  %1478 = vmatprep.subr.bf16.mxu1 %v4216_v23  ;;  %v4309_v22 = vld [vmem:[#allocation2 + $0x48c] ss:$16 sps:$4 sm:$0xff]   ;;  %v4304_v23 = vld [vmem:[#allocation2 + $0x480] ss:$16 sps:$4 sm:$0xff]  }
  0x8d   :  { %1350 = vmatpush1.bf16.msra.mxu0 %v4211_v24  ;;  %1479 = vmatpush1.bf16.msra.mxu1 %v4214_v25  ;;  %v4307_v24 = vld [vmem:[#allocation2 + $0x488] ss:$16 sps:$4 sm:$0xff]   ;;  %v4312_v25 = vld [vmem:[#allocation2 + $0x4a4] ss:$16 sps:$4 sm:$0xff]  }
  0x8e   :  { %1351 = vmatprep.subr.bf16.mxu0 %v4219_v26  ;;  %1480 = vmatprep.subr.bf16.mxu1 %v4222_v27  ;;  %v4315_v26 = vld [vmem:[#allocation2 + $0x4ac] ss:$16 sps:$4 sm:$0xff]   ;;  %v4310_v27 = vld [vmem:[#allocation2 + $0x4a0] ss:$16 sps:$4 sm:$0xff]  }
  0x91   :  { %1352 = vmatpush1.bf16.msra.mxu0 %v4217_v28  ;;  %1481 = vmatpush1.bf16.msra.mxu1 %v4220_v29  ;;  %v4313_v28 = vld [vmem:[#allocation2 + $0x4a8] ss:$16 sps:$4 sm:$0xff]   ;;  %v4318_v29 = vld [vmem:[#allocation2 + $0x4c4] ss:$16 sps:$4 sm:$0xff]  }
  0x92   :  { %1353 = vmatprep.subr.bf16.mxu0 %v4225_v31  ;;  %1482 = vmatprep.subr.bf16.mxu1 %v4228_v32  ;;  %v4316_v31 = vld [vmem:[#allocation2 + $0x4c0] ss:$16 sps:$4 sm:$0xff]   ;;  %v4319_v32 = vld [vmem:[#allocation2 + $0x4c8] ss:$16 sps:$4 sm:$0xff]  }
  0x95   :  { %1354 = vmatpush1.bf16.msra.mxu0 %v4223_v33  ;;  %1483 = vmatpush1.bf16.msra.mxu1 %v4226_v34  ;;  %v4324_v33 = vld [vmem:[#allocation2 + $0x4e4] ss:$16 sps:$4 sm:$0xff]   ;;  %v4327_v34 = vld [vmem:[#allocation2 + $0x4ec] ss:$16 sps:$4 sm:$0xff]  }
  0x96   :  { %1355 = vmatprep.subr.bf16.mxu0 %v4231_v35  ;;  %1484 = vmatprep.subr.bf16.mxu1 %v4234_v36  ;;  %v4322_v35 = vld [vmem:[#allocation2 + $0x4e0] ss:$16 sps:$4 sm:$0xff]   ;;  %v4325_v36 = vld [vmem:[#allocation2 + $0x4e8] ss:$16 sps:$4 sm:$0xff]  }
  0x99   :  { %1356 = vmatpush1.bf16.msra.mxu0 %v4229_v37  ;;  %1485 = vmatpush1.bf16.msra.mxu1 %v4232_v38  ;;  %v4330_v37 = vld [vmem:[#allocation2 + $0x504] ss:$16 sps:$4 sm:$0xff]   ;;  %v4333_v38 = vld [vmem:[#allocation2 + $0x50c] ss:$16 sps:$4 sm:$0xff]  }
  0x9a   :  { %1357 = vmatprep.subr.bf16.mxu0 %v4237_v39  ;;  %1486 = vmatprep.subr.bf16.mxu1 %v4240_v40  ;;  %v4328_v39 = vld [vmem:[#allocation2 + $0x500] ss:$16 sps:$4 sm:$0xff]   ;;  %v4331_v40 = vld [vmem:[#allocation2 + $0x508] ss:$16 sps:$4 sm:$0xff]  }
  0x9d   :  { %1358 = vmatpush1.bf16.msra.mxu0 %v4235_v41  ;;  %1487 = vmatpush1.bf16.msra.mxu1 %v4238_v42  ;;  %v4336_v41 = vld [vmem:[#allocation2 + $0x524] ss:$16 sps:$4 sm:$0xff]   ;;  %v4339_v42 = vld [vmem:[#allocation2 + $0x52c] ss:$16 sps:$4 sm:$0xff]  }
  0x9e   :  { %1359 = vmatprep.subr.bf16.mxu0 %v4243_v43  ;;  %1488 = vmatprep.subr.bf16.mxu1 %v4246_v44  ;;  %v4334_v43 = vld [vmem:[#allocation2 + $0x520] ss:$16 sps:$4 sm:$0xff]   ;;  %v4337_v44 = vld [vmem:[#allocation2 + $0x528] ss:$16 sps:$4 sm:$0xff]  }
  0xa1   :  { %1360 = vmatpush1.bf16.msra.mxu0 %v4241_v45  ;;  %1489 = vmatpush1.bf16.msra.mxu1 %v4244_v46  ;;  %v4342_v45 = vld [vmem:[#allocation2 + $0x544] ss:$16 sps:$4 sm:$0xff]   ;;  %v4345_v46 = vld [vmem:[#allocation2 + $0x54c] ss:$16 sps:$4 sm:$0xff]  }
  0xa2   :  { %1361 = vmatprep.subr.bf16.mxu0 %v4249_v47  ;;  %1490 = vmatprep.subr.bf16.mxu1 %v4252_v48  ;;  %v4340_v47 = vld [vmem:[#allocation2 + $0x540] ss:$16 sps:$4 sm:$0xff]   ;;  %v4343_v48 = vld [vmem:[#allocation2 + $0x548] ss:$16 sps:$4 sm:$0xff]  }
  0xa5   :  { %1362 = vmatpush1.bf16.msra.mxu0 %v4247_v49  ;;  %1491 = vmatpush1.bf16.msra.mxu1 %v4250_v50  ;;  %v4348_v49 = vld [vmem:[#allocation2 + $0x564] ss:$16 sps:$4 sm:$0xff]   ;;  %v4351_v50 = vld [vmem:[#allocation2 + $0x56c] ss:$16 sps:$4 sm:$0xff]  }
  0xa6   :  { %1363 = vmatprep.subr.bf16.mxu0 %v4255_v51  ;;  %1492 = vmatprep.subr.bf16.mxu1 %v4258_v52  ;;  %v4346_v51 = vld [vmem:[#allocation2 + $0x560] ss:$16 sps:$4 sm:$0xff]   ;;  %v4349_v52 = vld [vmem:[#allocation2 + $0x568] ss:$16 sps:$4 sm:$0xff]  }
  0xa9   :  { %1364 = vmatpush1.bf16.msra.mxu0 %v4253_v53  ;;  %1493 = vmatpush1.bf16.msra.mxu1 %v4256_v54  ;;  %v4354_v53 = vld [vmem:[#allocation2 + $0x584] ss:$16 sps:$4 sm:$0xff]   ;;  %v4357_v54 = vld [vmem:[#allocation2 + $0x58c] ss:$16 sps:$4 sm:$0xff]  }
  0xaa   :  { %1365 = vmatprep.subr.bf16.mxu0 %v4261_v55  ;;  %1494 = vmatprep.subr.bf16.mxu1 %v4264_v56  ;;  %v4352_v55 = vld [vmem:[#allocation2 + $0x580] ss:$16 sps:$4 sm:$0xff]   ;;  %v4355_v56 = vld [vmem:[#allocation2 + $0x588] ss:$16 sps:$4 sm:$0xff]  }
  0xad   :  { %1366 = vmatpush1.bf16.msra.mxu0 %v4259_v57  ;;  %1495 = vmatpush1.bf16.msra.mxu1 %v4262_v58  ;;  %v4360_v57 = vld [vmem:[#allocation2 + $0x5a4] ss:$16 sps:$4 sm:$0xff]   ;;  %v4363_v58 = vld [vmem:[#allocation2 + $0x5ac] ss:$16 sps:$4 sm:$0xff]  }
  0xae   :  { %1367 = vmatprep.subr.bf16.mxu0 %v4267_v59  ;;  %1496 = vmatprep.subr.bf16.mxu1 %v4270_v60  ;;  %v4358_v59 = vld [vmem:[#allocation2 + $0x5a0] ss:$16 sps:$4 sm:$0xff]   ;;  %v4361_v60 = vld [vmem:[#allocation2 + $0x5a8] ss:$16 sps:$4 sm:$0xff]  }
  0xb1   :  { %1368 = vmatpush1.bf16.msra.mxu0 %v4265_v61  ;;  %1497 = vmatpush1.bf16.msra.mxu1 %v4268_v62  ;;  %v4366_v61 = vld [vmem:[#allocation2 + $0x5c4] ss:$16 sps:$4 sm:$0xff]   ;;  %v4369_v62 = vld [vmem:[#allocation2 + $0x5cc] ss:$16 sps:$4 sm:$0xff]  }
  0xb2   :  { %1369 = vmatprep.subr.bf16.mxu0 %v4273_v63  ;;  %1498 = vmatprep.subr.bf16.mxu1 %v4276_v0  ;;  %v4364_v63 = vld [vmem:[#allocation2 + $0x5c0] ss:$16 sps:$4 sm:$0xff]   ;;  %v4367_v0 = vld [vmem:[#allocation2 + $0x5c8] ss:$16 sps:$4 sm:$0xff]  }
  0xb5   :  { %1370 = vmatpush1.bf16.msra.mxu0 %v4271_v1  ;;  %1499 = vmatpush1.bf16.msra.mxu1 %v4274_v2  ;;  %v4372_v1 = vld [vmem:[#allocation2 + $0x5e4] ss:$16 sps:$4 sm:$0xff]   ;;  %v4375_v2 = vld [vmem:[#allocation2 + $0x5ec] ss:$16 sps:$4 sm:$0xff]  }
  0xb6   :  { %1382 = vmatprep.subr.bf16.mxu0 %v4282_v3  ;;  %1511 = vmatprep.subr.bf16.mxu1 %v4285_v4  ;;  %v4370_v3 = vld [vmem:[#allocation2 + $0x5e0] ss:$16 sps:$4 sm:$0xff]   ;;  %v4373_v4 = vld [vmem:[#allocation2 + $0x5e8] ss:$16 sps:$4 sm:$0xff]  }
  0xb8   :  { %1372 = vmatmul.mubr.bf16.vlgmr.msra.gmra.mrb[0].mxu0 %v4277_v5  ;;  %1501 = vmatmul.mubr.bf16.vlgmr.msra.gmra.mrb[0].mxu1 %v4277_v5  ;;  %v4376_v5 = vld [vmem:[%s5073_s0 + $0x10] ss:$24 sps:$4 sm:$0xff]  }
  0xb9   :  { %1383 = vmatpush1.bf16.msra.mxu0 %v4280_v6  ;;  %1512 = vmatpush1.bf16.msra.mxu1 %v4283_v7  ;;  %v4379_v6 = vld [vmem:[#allocation5] ss:$16 sps:$4 sm:$0xff]   ;;  %v4381_v7 = vld [vmem:[#allocation5 + $0x4] ss:$16 sps:$4 sm:$0xff]  }
  0xba   :  { %1384 = vmatprep.subr.bf16.mxu0 %v4288_v8  ;;  %1513 = vmatprep.subr.bf16.mxu1 %v4291_v9  ;;  %v4382_v8 = vld [vmem:[#allocation5 + $0x8] ss:$16 sps:$4 sm:$0xff]   ;;  %v4384_v9 = vld [vmem:[#allocation5 + $0xc] ss:$16 sps:$4 sm:$0xff]  }
  0xbb   :  { %1414 = vmatprep.mubr.bf16.mxu0 %v4378_v13  ;;  %1543 = vmatprep.mubr.bf16.mxu1 %v4378_v13  ;;  %v4388_v13 = vld [vmem:[#allocation5 + $0x28] ss:$16 sps:$4 sm:$0xff]  }
  0xbd   :  { %1385 = vmatpush1.bf16.msra.mxu0 %v4286_v10  ;;  %1514 = vmatpush1.bf16.msra.mxu1 %v4289_v11  ;;  %v4387_v10 = vld [vmem:[#allocation5 + $0x24] ss:$16 sps:$4 sm:$0xff]   ;;  %v4390_v11 = vld [vmem:[#allocation5 + $0x2c] ss:$16 sps:$4 sm:$0xff]  }
  0xbe   :  { %1386 = vmatprep.subr.bf16.mxu0 %v4294_v12  ;;  %1515 = vmatprep.subr.bf16.mxu1 %v4297_v14  ;;  %v4385_v12 = vld [vmem:[#allocation5 + $0x20] ss:$16 sps:$4 sm:$0xff]   ;;  %v4393_v14 = vld [vmem:[#allocation5 + $0x44] ss:$16 sps:$4 sm:$0xff]  }
  0xc1   :  { %1387 = vmatpush1.bf16.msra.mxu0 %v4292_v15  ;;  %1516 = vmatpush1.bf16.msra.mxu1 %v4295_v16  ;;  %v4396_v15 = vld [vmem:[#allocation5 + $0x4c] ss:$16 sps:$4 sm:$0xff]   ;;  %v4391_v16 = vld [vmem:[#allocation5 + $0x40] ss:$16 sps:$4 sm:$0xff]  }
  0xc2   :  { %1388 = vmatprep.subr.bf16.mxu0 %v4300_v17  ;;  %1517 = vmatprep.subr.bf16.mxu1 %v4303_v18  ;;  %v4394_v17 = vld [vmem:[#allocation5 + $0x48] ss:$16 sps:$4 sm:$0xff]   ;;  %v4399_v18 = vld [vmem:[#allocation5 + $0x64] ss:$16 sps:$4 sm:$0xff]  }
  0xc5   :  { %1389 = vmatpush1.bf16.msra.mxu0 %v4298_v19  ;;  %1518 = vmatpush1.bf16.msra.mxu1 %v4301_v20  ;;  %v4402_v19 = vld [vmem:[#allocation5 + $0x6c] ss:$16 sps:$4 sm:$0xff]   ;;  %v4397_v20 = vld [vmem:[#allocation5 + $0x60] ss:$16 sps:$4 sm:$0xff]  }
  0xc6   :  { %1390 = vmatprep.subr.bf16.mxu0 %v4306_v21  ;;  %1519 = vmatprep.subr.bf16.mxu1 %v4309_v22  ;;  %v4400_v21 = vld [vmem:[#allocation5 + $0x68] ss:$16 sps:$4 sm:$0xff]   ;;  %v4405_v22 = vld [vmem:[#allocation5 + $0x84] ss:$16 sps:$4 sm:$0xff]  }
  0xc9   :  { %1391 = vmatpush1.bf16.msra.mxu0 %v4304_v23  ;;  %1520 = vmatpush1.bf16.msra.mxu1 %v4307_v24  ;;  %v4408_v23 = vld [vmem:[#allocation5 + $0x8c] ss:$16 sps:$4 sm:$0xff]   ;;  %v4403_v24 = vld [vmem:[#allocation5 + $0x80] ss:$16 sps:$4 sm:$0xff]  }
  0xca   :  { %1392 = vmatprep.subr.bf16.mxu0 %v4312_v25  ;;  %1521 = vmatprep.subr.bf16.mxu1 %v4315_v26  ;;  %v4406_v25 = vld [vmem:[#allocation5 + $0x88] ss:$16 sps:$4 sm:$0xff]   ;;  %v4411_v26 = vld [vmem:[#allocation5 + $0xa4] ss:$16 sps:$4 sm:$0xff]  }
  0xcd   :  { %1393 = vmatpush1.bf16.msra.mxu0 %v4310_v27  ;;  %1522 = vmatpush1.bf16.msra.mxu1 %v4313_v28  ;;  %v4414_v27 = vld [vmem:[#allocation5 + $0xac] ss:$16 sps:$4 sm:$0xff]   ;;  %v4409_v28 = vld [vmem:[#allocation5 + $0xa0] ss:$16 sps:$4 sm:$0xff]  }
  0xce   :  { %1394 = vmatprep.subr.bf16.mxu0 %v4318_v29  ;;  %1523 = vmatprep.subr.bf16.mxu1 %v4321_v30  ;;  %v4412_v29 = vld [vmem:[#allocation5 + $0xa8] ss:$16 sps:$4 sm:$0xff]   ;;  %v4417_v30 = vld [vmem:[#allocation5 + $0xc4] ss:$16 sps:$4 sm:$0xff]  }
  0xd1   :  { %1395 = vmatpush1.bf16.msra.mxu0 %v4316_v31  ;;  %1524 = vmatpush1.bf16.msra.mxu1 %v4319_v32  ;;  %v4420_v31 = vld [vmem:[#allocation5 + $0xcc] ss:$16 sps:$4 sm:$0xff]   ;;  %v4415_v32 = vld [vmem:[#allocation5 + $0xc0] ss:$16 sps:$4 sm:$0xff]  }
  0xd2   :  { %1396 = vmatprep.subr.bf16.mxu0 %v4324_v33  ;;  %1525 = vmatprep.subr.bf16.mxu1 %v4327_v34  ;;  %v4418_v33 = vld [vmem:[#allocation5 + $0xc8] ss:$16 sps:$4 sm:$0xff]   ;;  %v4423_v34 = vld [vmem:[#allocation5 + $0xe4] ss:$16 sps:$4 sm:$0xff]  }
  0xd5   :  { %1397 = vmatpush1.bf16.msra.mxu0 %v4322_v35  ;;  %1526 = vmatpush1.bf16.msra.mxu1 %v4325_v36  ;;  %v4426_v35 = vld [vmem:[#allocation5 + $0xec] ss:$16 sps:$4 sm:$0xff]   ;;  %v4421_v36 = vld [vmem:[#allocation5 + $0xe0] ss:$16 sps:$4 sm:$0xff]  }
  0xd6   :  { %1398 = vmatprep.subr.bf16.mxu0 %v4330_v37  ;;  %1527 = vmatprep.subr.bf16.mxu1 %v4333_v38  ;;  %v4424_v37 = vld [vmem:[#allocation5 + $0xe8] ss:$16 sps:$4 sm:$0xff]   ;;  %v286_v38 = vlaneseq }
  0xd9   :  { %1399 = vmatpush1.bf16.msra.mxu0 %v4328_v39  ;;  %1528 = vmatpush1.bf16.msra.mxu1 %v4331_v40  ;;  %v287_v39 = vshrl.u32 %v286_v38, 7 }
  0xda   :  { %1400 = vmatprep.subr.bf16.mxu0 %v4336_v41  ;;  %1529 = vmatprep.subr.bf16.mxu1 %v4339_v42  ;;  %v72_v42 = vld [vmem:[%s5079_s6] ss:$8 sm:$0xf] }
  0xdb   :  { %v4841_v40 = vsub.s32 0, %v287_v39  ;;  %v4843_v41 = vsub.s32 2, %v287_v39 }
  0xdd   :  { %1401 = vmatpush1.bf16.msra.mxu0 %v4334_v43  ;;  %1530 = vmatpush1.bf16.msra.mxu1 %v4337_v44  ;;  %v4848_v43 = vsub.s32 1, %v287_v39  ;;  %v4850_v44 = vsub.s32 3, %v287_v39  ;;  %v4456_v39 = vld [vmem:[#allocation5 + $0x18c] ss:$16 sps:$4 sm:$0xff]  }
  0xde   :  { %1402 = vmatprep.subr.bf16.mxu0 %v4342_v45  ;;  %1531 = vmatprep.subr.bf16.mxu1 %v4345_v46  ;;  %v289_v45 = vrot.slane %v72_v42, %v4841_v40  ;;  %v297_v46 = vrot.slane %v72_v42, %v4843_v41 }
  0xe1   :  { %1403 = vmatpush1.bf16.msra.mxu0 %v4340_v47  ;;  %1532 = vmatpush1.bf16.msra.mxu1 %v4343_v48  ;;  %v293_v47 = vrot.slane %v72_v42, %v4848_v43  ;;  %v301_v48 = vrot.slane %v72_v42, %v4850_v44  ;;  %v4451_v42 = vld [vmem:[#allocation5 + $0x180] ss:$16 sps:$4 sm:$0xff]  }
  0xe2   :  { %1404 = vmatprep.subr.bf16.mxu0 %v4348_v49  ;;  %1533 = vmatprep.subr.bf16.mxu1 %v4351_v50 }
  0xe5   :  { %1405 = vmatpush1.bf16.msra.mxu0 %v4346_v51  ;;  %1534 = vmatpush1.bf16.msra.mxu1 %v4349_v52 }
  0xe6   :  { %1406 = vmatprep.subr.bf16.mxu0 %v4354_v53  ;;  %1535 = vmatprep.subr.bf16.mxu1 %v4357_v54 }
  0xe9   :  { %1407 = vmatpush1.bf16.msra.mxu0 %v4352_v55  ;;  %1536 = vmatpush1.bf16.msra.mxu1 %v4355_v56 }
  0xea   :  { %1408 = vmatprep.subr.bf16.mxu0 %v4360_v57  ;;  %1537 = vmatprep.subr.bf16.mxu1 %v4363_v58 }
  0xed   :  { %1409 = vmatpush1.bf16.msra.mxu0 %v4358_v59  ;;  %1538 = vmatpush1.bf16.msra.mxu1 %v4361_v60 }
  0xee   :  { %1410 = vmatprep.subr.bf16.mxu0 %v4366_v61  ;;  %1539 = vmatprep.subr.bf16.mxu1 %v4369_v62 }
  0xf1   :  { %1411 = vmatpush1.bf16.msra.mxu0 %v4364_v63  ;;  %1540 = vmatpush1.bf16.msra.mxu1 %v4367_v0 }
  0xf2   :  { %1412 = vmatprep.subr.bf16.mxu0 %v4372_v1  ;;  %1541 = vmatprep.subr.bf16.mxu1 %v4375_v2 }
  0xf5   :  { %1413 = vmatpush1.bf16.msra.mxu0 %v4370_v3  ;;  %1542 = vmatpush1.bf16.msra.mxu1 %v4373_v4 }
  0xf6   :  { %2472 = vmatprep.subr.bf16.mxu0 %v4381_v7  ;;  %2558 = vmatprep.subr.bf16.mxu1 %v4384_v9 }
  0xf8   :  { %1415 = vmatmul.mubr.bf16.vlgmr.msra.gmra.mrb[0].mxu0 %v4376_v5  ;;  %1544 = vmatmul.mubr.bf16.vlgmr.msra.gmra.mrb[0].mxu1 %v4376_v5 }
  0xf9   :  { %2473 = vmatpush1.bf16.msra.mxu0 %v4379_v6  ;;  %2559 = vmatpush1.bf16.msra.mxu1 %v4382_v8 }
  0xfa   :  { %2474 = vmatprep.subr.bf16.mxu0 %v4387_v10  ;;  %2560 = vmatprep.subr.bf16.mxu1 %v4390_v11 }
  0xfd   :  { %2475 = vmatpush1.bf16.msra.mxu0 %v4385_v12  ;;  %2561 = vmatpush1.bf16.msra.mxu1 %v4388_v13 }
  0xfe   :  { %2476 = vmatprep.subr.bf16.mxu0 %v4393_v14  ;;  %2562 = vmatprep.subr.bf16.mxu1 %v4396_v15 }
 0x101   :  { %2477 = vmatpush1.bf16.msra.mxu0 %v4391_v16  ;;  %2563 = vmatpush1.bf16.msra.mxu1 %v4394_v17 }
 0x102   :  { %2478 = vmatprep.subr.bf16.mxu0 %v4399_v18  ;;  %2564 = vmatprep.subr.bf16.mxu1 %v4402_v19 }
 0x105   :  { %2479 = vmatpush1.bf16.msra.mxu0 %v4397_v20  ;;  %2565 = vmatpush1.bf16.msra.mxu1 %v4400_v21  ;;  %v4429_v21 = vld [vmem:[#allocation5 + $0x104] ss:$16 sps:$4 sm:$0xff]  }
 0x106   :  { %2480 = vmatprep.subr.bf16.mxu0 %v4405_v22  ;;  %2566 = vmatprep.subr.bf16.mxu1 %v4408_v23  ;;  %v4432_v22 = vld [vmem:[#allocation5 + $0x10c] ss:$16 sps:$4 sm:$0xff]   ;;  %v4427_v23 = vld [vmem:[#allocation5 + $0x100] ss:$16 sps:$4 sm:$0xff]  }
 0x109   :  { %2481 = vmatpush1.bf16.msra.mxu0 %v4403_v24  ;;  %2567 = vmatpush1.bf16.msra.mxu1 %v4406_v25  ;;  %v4430_v24 = vld [vmem:[#allocation5 + $0x108] ss:$16 sps:$4 sm:$0xff]   ;;  %v4435_v25 = vld [vmem:[#allocation5 + $0x124] ss:$16 sps:$4 sm:$0xff]  }
 0x10a   :  { %2482 = vmatprep.subr.bf16.mxu0 %v4411_v26  ;;  %2568 = vmatprep.subr.bf16.mxu1 %v4414_v27  ;;  %v4438_v26 = vld [vmem:[#allocation5 + $0x12c] ss:$16 sps:$4 sm:$0xff]   ;;  %v4433_v27 = vld [vmem:[#allocation5 + $0x120] ss:$16 sps:$4 sm:$0xff]  }
 0x10d   :  { %2483 = vmatpush1.bf16.msra.mxu0 %v4409_v28  ;;  %2569 = vmatpush1.bf16.msra.mxu1 %v4412_v29  ;;  %v4436_v28 = vld [vmem:[#allocation5 + $0x128] ss:$16 sps:$4 sm:$0xff]   ;;  %v4441_v29 = vld [vmem:[#allocation5 + $0x144] ss:$16 sps:$4 sm:$0xff]  }
 0x10e   :  { %2484 = vmatprep.subr.bf16.mxu0 %v4417_v30  ;;  %2570 = vmatprep.subr.bf16.mxu1 %v4420_v31  ;;  %v4444_v30 = vld [vmem:[#allocation5 + $0x14c] ss:$16 sps:$4 sm:$0xff]   ;;  %v4439_v31 = vld [vmem:[#allocation5 + $0x140] ss:$16 sps:$4 sm:$0xff]  }
 0x111   :  { %2485 = vmatpush1.bf16.msra.mxu0 %v4415_v32  ;;  %2571 = vmatpush1.bf16.msra.mxu1 %v4418_v33  ;;  %v4442_v32 = vld [vmem:[#allocation5 + $0x148] ss:$16 sps:$4 sm:$0xff]   ;;  %v4447_v33 = vld [vmem:[#allocation5 + $0x164] ss:$16 sps:$4 sm:$0xff]  }
 0x112   :  { %2486 = vmatprep.subr.bf16.mxu0 %v4423_v34  ;;  %2572 = vmatprep.subr.bf16.mxu1 %v4426_v35  ;;  %v4450_v34 = vld [vmem:[#allocation5 + $0x16c] ss:$16 sps:$4 sm:$0xff]   ;;  %v4445_v35 = vld [vmem:[#allocation5 + $0x160] ss:$16 sps:$4 sm:$0xff]  }
 0x115   :  { %2487 = vmatpush1.bf16.msra.mxu0 %v4421_v36  ;;  %2573 = vmatpush1.bf16.msra.mxu1 %v4424_v37  ;;  %v4448_v36 = vld [vmem:[#allocation5 + $0x168] ss:$16 sps:$4 sm:$0xff]   ;;  %v4453_v37 = vld [vmem:[#allocation5 + $0x184] ss:$16 sps:$4 sm:$0xff]  }
 0x116   :  { %2488 = vmatprep.subr.bf16.mxu0 %v4429_v21  ;;  %2574 = vmatprep.subr.bf16.mxu1 %v4432_v22  ;;  %v3539_v21 = vld [vmem:[%s5079_s6 + $0x2] ss:$8 sm:$0xf] }
 0x119   :  { %2489 = vmatpush1.bf16.msra.mxu0 %v4427_v23  ;;  %2575 = vmatpush1.bf16.msra.mxu1 %v4430_v24 }
 0x11a   :  { %2490 = vmatprep.subr.bf16.mxu0 %v4435_v25  ;;  %2576 = vmatprep.subr.bf16.mxu1 %v4438_v26 }
 0x11d   :  { %2491 = vmatpush1.bf16.msra.mxu0 %v4433_v27  ;;  %2577 = vmatpush1.bf16.msra.mxu1 %v4436_v28 }
 0x11e   :  { %2492 = vmatprep.subr.bf16.mxu0 %v4441_v29  ;;  %2578 = vmatprep.subr.bf16.mxu1 %v4444_v30  ;;  %v1654_v29 = vrot.slane %v3539_v21, %v4843_v41 }
 0x121   :  { %2493 = vmatpush1.bf16.msra.mxu0 %v4439_v31  ;;  %2579 = vmatpush1.bf16.msra.mxu1 %v4442_v32 }
 0x122   :  { %2494 = vmatprep.subr.bf16.mxu0 %v4447_v33  ;;  %2580 = vmatprep.subr.bf16.mxu1 %v4450_v34  ;;  %v1650_v34 = vrot.slane %v3539_v21, %v4848_v43 }
 0x125   :  { %2495 = vmatpush1.bf16.msra.mxu0 %v4445_v35  ;;  %2581 = vmatpush1.bf16.msra.mxu1 %v4448_v36  ;;  %v1646_v35 = vrot.slane %v3539_v21, %v4841_v40 }
 0x126   :  { %2496 = vmatprep.subr.bf16.mxu0 %v4453_v37  ;;  %2582 = vmatprep.subr.bf16.mxu1 %v4456_v39 }
 0x129   :  { %2497 = vmatpush1.bf16.msra.mxu0 %v4451_v42 }
 0x1cb   :  { %v1416_v49 = vpop.f32.mrb[0].mxu0  ;;  %v1545_v50 = vpop.f32.mrb[0].mxu1 }
 0x1cc   :  { %v4856_v51 = vadd.f32 %v1416_v49, %v289_v45  ;;  %v4858_v52 = vadd.f32 %v1545_v50, %v297_v46  ;;  %v1418_v53 = vpop.f32.mrb[1].mxu0  ;;  %v1547_v54 = vpop.f32.mrb[1].mxu1  ;;  %v4460_v49 = vld [vmem:[#allocation5 + $0x1a8] ss:$16 sps:$4 sm:$0xff]   ;;  %v4465_v50 = vld [vmem:[#allocation5 + $0x1c4] ss:$16 sps:$4 sm:$0xff]  }
 0x1cd   :  { %v4860_v55 = vadd.f32 %v1418_v53, %v293_v47  ;;  %v1420_v56 = vpop.f32.mrb[2].mxu0  ;;  %v1549_v57 = vpop.f32.mrb[2].mxu1  ;;  %v4864_v59 = vadd.f32 %v1547_v54, %v301_v48  ;;  %v4468_v53 = vld [vmem:[#allocation5 + $0x1cc] ss:$16 sps:$4 sm:$0xff]   ;;  %v4463_v54 = vld [vmem:[#allocation5 + $0x1c0] ss:$16 sps:$4 sm:$0xff]  }
 0x1ce   :  { %v1567_v58 = vmul.f32 %v4856_v51, %v4856_v51  ;;  %v4866_v60 = vadd.f32 %v1420_v56, %v289_v45  ;;  %v4868_v61 = vadd.f32 %v1549_v57, %v297_v46  ;;  %v1422_v62 = vpop.f32.mrb[3].mxu0  ;;  %v1551_v63 = vpop.f32.mrb[3].mxu1  ;;  %v1569_v4 = vmul.f32 %v4858_v52, %v4858_v52  ;;  %v4454_v45 = vld [vmem:[#allocation5 + $0x188] ss:$16 sps:$4 sm:$0xff]   ;;  %v4459_v46 = vld [vmem:[#allocation5 + $0x1a4] ss:$16 sps:$4 sm:$0xff]  }
 0x1cf   :  { %v1568_v0 = vmul.f32 %v4860_v55, %v4860_v55  ;;  %v4872_v1 = vadd.f32 %v1422_v62, %v293_v47  ;;  %v1554_v2 = vadd.f32 %v4860_v55, %v4856_v51  ;;  %v4887_v10 = vadd.f32 %v1551_v63, %v301_v48  ;;  %v4462_v47 = vld [vmem:[#allocation5 + $0x1ac] ss:$16 sps:$4 sm:$0xff]   ;;  %2583 = vmatpush1.bf16.msra.mxu1 %v4454_v45  ;;  %v4457_v48 = vld [vmem:[#allocation5 + $0x1a0] ss:$16 sps:$4 sm:$0xff]   ;;  %v4466_v56 = vld [vmem:[#allocation5 + $0x1c8] ss:$16 sps:$4 sm:$0xff]  }
 0x1d0   :  { %v1571_v3 = vmul.f32 %v4866_v60, %v4866_v60  ;;  %v1573_v9 = vmul.f32 %v4868_v61, %v4868_v61  ;;  %v1570_v11 = vmul.f32 %v4864_v59, %v4864_v59  ;;  %2498 = vmatprep.subr.bf16.mxu0 %v4459_v46  ;;  %2584 = vmatprep.subr.bf16.mxu1 %v4462_v47  ;;  %v4471_v57 = vld [vmem:[#allocation5 + $0x1e4] ss:$16 sps:$4 sm:$0xff]   ;;  %v4469_v62 = vld [vmem:[#allocation5 + $0x1e0] ss:$16 sps:$4 sm:$0xff]   ;;  %v4472_v63 = vld [vmem:[#allocation5 + $0x1e8] ss:$16 sps:$4 sm:$0xff]  }
 0x1d1   :  { %v1559_v5 = vadd.f32 %v4872_v1, %v4866_v60  ;;  %v1572_v6 = vmul.f32 %v4872_v1, %v4872_v1  ;;  %v1555_v7 = vadd.f32 %v4858_v52, %v1554_v2  ;;  %v1575_v8 = vadd.f32 %v1568_v0, %v1567_v58  ;;  %2499 = vmatpush1.bf16.msra.mxu0 %v4457_v48  ;;  %v4474_v58 = vld [vmem:[#allocation5 + $0x1ec] ss:$16 sps:$4 sm:$0xff]   ;;  %v4477_v0 = vld [vmem:[#allocation5 + $0x204] ss:$16 sps:$4 sm:$0xff]  }
 0x1d2   :  { %v1574_v19 = vmul.f32 %v4887_v10, %v4887_v10  ;;  %2500 = vmatprep.subr.bf16.mxu0 %v4465_v50  ;;  %v4480_v2 = vld [vmem:[#allocation5 + $0x20c] ss:$16 sps:$4 sm:$0xff]  }
 0x1d3   :  { %v1556_v12 = vadd.f32 %v4864_v59, %v1555_v7  ;;  %v1576_v13 = vadd.f32 %v1575_v8, %v1569_v4  ;;  %v1560_v14 = vadd.f32 %v4868_v61, %v1559_v5  ;;  %v1580_v15 = vadd.f32 %v1572_v6, %v1571_v3  ;;  %2585 = vmatpush1.bf16.msra.mxu1 %v4460_v49 }
 0x1d4   :  { %2586 = vmatprep.subr.bf16.mxu1 %v4468_v53 }
 0x1d5   :  { %1557 = vadd.xlane.f32.xlu0 %v1556_v12  ;;  %v1577_v16 = vadd.f32 %v1576_v13, %v1570_v11  ;;  %v1581_v17 = vadd.f32 %v1580_v15, %v1573_v9  ;;  %v1561_v18 = vadd.f32 %v4887_v10, %v1560_v14  ;;  %2501 = vmatpush1.bf16.msra.mxu0 %v4463_v54 }
 0x1d6   :  { %2502 = vmatprep.subr.bf16.mxu0 %v4471_v57 }
 0x1d7   :  { %1578 = vadd.xlane.f32.xlu1 %v1577_v16  ;;  %v1582_v20 = vadd.f32 %v1581_v17, %v1574_v19  ;;  %2587 = vmatpush1.bf16.msra.mxu1 %v4466_v56 }
 0x1d8   :  { %2588 = vmatprep.subr.bf16.mxu1 %v4474_v58  ;;  %v1658_v58 = vrot.slane %v3539_v21, %v4850_v44  ;;  %v4481_v21 = vld [vmem:[#allocation5 + $0x220] ss:$16 sps:$4 sm:$0xff]  }
 0x1d9   :  { %1562 = vadd.xlane.f32.xlu0 %v1561_v18  ;;  %2503 = vmatpush1.bf16.msra.mxu0 %v4469_v62 }
 0x1da   :  { %2515 = vmatprep.subr.bf16.mxu0 %v4477_v0 }
 0x1db   :  { %1583 = vadd.xlane.f32.xlu1 %v1582_v20  ;;  %2589 = vmatpush1.bf16.msra.mxu1 %v4472_v63  ;;  %v3538_v20 = vld [vmem:[%s5079_s6 + $0x1] ss:$8 sm:$0xf] }
 0x1dc   :  { %2601 = vmatprep.subr.bf16.mxu1 %v4480_v2  ;;  %v1621_v22 = vrot.slane %v3538_v20, %v4848_v43  ;;  %v1617_v23 = vrot.slane %v3538_v20, %v4841_v40  ;;  %v1625_v27 = vrot.slane %v3538_v20, %v4843_v41 }
 0x262   :  { %v1558_v3 = vpop.xlane.xlu0 %1557 }
 0x263   :  { %v1565_v4 = vmul.f32 0.001953125, %v1558_v3 }
 0x264   :  { %v1579_v5 = vpop.xlane.xlu1 %1578 }
 0x265   :  { %v1585_v6 = vmul.f32 0.001953125, %v1579_v5  ;;  %v1587_v7 = vmul.f32 %v1565_v4, %v1565_v4  ;;  %v1593_v24 = vsub.f32 %v4856_v51, %v1565_v4  ;;  %v1595_v25 = vsub.f32 %v4858_v52, %v1565_v4 }
 0x266   :  { %v1563_v8 = vpop.xlane.xlu0 %1562  ;;  %v1594_v26 = vsub.f32 %v4860_v55, %v1565_v4  ;;  %v1596_v32 = vsub.f32 %v4864_v59, %v1565_v4  ;;  %v1629_v51 = vrot.slane %v3538_v20, %v4850_v44 }
 0x267   :  { %v1589_v9 = vsub.f32 %v1585_v6, %v1587_v7  ;;  %v1566_v11 = vmul.f32 0.001953125, %v1563_v8 }
 0x268   :  { %v1584_v12 = vpop.xlane.xlu1 %1583 }
 0x269   :  { %v1591_v13 = vmax.f32 %v1589_v9, 0.0  ;;  %v1586_v14 = vmul.f32 0.001953125, %v1584_v12  ;;  %v1588_v15 = vmul.f32 %v1566_v11, %v1566_v11  ;;  %v1597_v39 = vsub.f32 %v4866_v60, %v1566_v11 }
 0x26a   :  { %v1599_v42 = vsub.f32 %v4868_v61, %v1566_v11  ;;  %v1598_v45 = vsub.f32 %v4872_v1, %v1566_v11  ;;  %v1600_v46 = vsub.f32 %v4887_v10, %v1566_v11 }
 0x26b   :  { %v1601_v16 = vadd.f32 1e-05, %v1591_v13  ;;  %v1590_v17 = vsub.f32 %v1586_v14, %v1588_v15  ;;  %v4475_v13 = vld [vmem:[#allocation5 + $0x200] ss:$16 sps:$4 sm:$0xff]   ;;  %v4478_v14 = vld [vmem:[#allocation5 + $0x208] ss:$16 sps:$4 sm:$0xff]  }
 0x26d   :  { %4611 = vrsqrt.f32 %v1601_v16  ;;  %v1592_v18 = vmax.f32 %v1590_v17, 0.0 }
 0x26f   :  { %v1602_v19 = vadd.f32 1e-05, %v1592_v18  ;;  %v4483_v18 = vld [vmem:[#allocation5 + $0x224] ss:$16 sps:$4 sm:$0xff]  }
 0x271   :  { %4613 = vrsqrt.f32 %v1602_v19  ;;  %v4486_v19 = vld [vmem:[#allocation5 + $0x22c] ss:$16 sps:$4 sm:$0xff]  }
 0x277   :  { %v4612_v28 = vpop.eup %4611 }
 0x278   :  { %v1606_v30 = vmul.f32 %v4612_v28, %v1594_v26  ;;  %v1605_v31 = vmul.f32 %v4612_v28, %v1593_v24  ;;  %v1607_v33 = vmul.f32 %v4612_v28, %v1595_v25  ;;  %v1608_v37 = vmul.f32 %v4612_v28, %v1596_v32  ;;  %v4492_v24 = vld [vmem:[#allocation5 + $0x24c] ss:$16 sps:$4 sm:$0xff]   ;;  %v4487_v25 = vld [vmem:[#allocation5 + $0x240] ss:$16 sps:$4 sm:$0xff]   ;;  %v4490_v26 = vld [vmem:[#allocation5 + $0x248] ss:$16 sps:$4 sm:$0xff]  }
 0x279   :  { %v4498_v28 = vld [vmem:[#allocation5 + $0x26c] ss:$16 sps:$4 sm:$0xff]  }
 0x27a   :  { %v1635_v36 = vmul.f32 %v1621_v22, %v1606_v30  ;;  %v1634_v52 = vmul.f32 %v1617_v23, %v1605_v31  ;;  %v1636_v55 = vmul.f32 %v1625_v27, %v1607_v33  ;;  %v1637_v57 = vmul.f32 %v1629_v51, %v1608_v37  ;;  %v4496_v30 = vld [vmem:[#allocation5 + $0x268] ss:$16 sps:$4 sm:$0xff]   ;;  %v4501_v31 = vld [vmem:[#allocation5 + $0x284] ss:$16 sps:$4 sm:$0xff]   ;;  %v4504_v32 = vld [vmem:[#allocation5 + $0x28c] ss:$16 sps:$4 sm:$0xff]  }
 0x27b   :  { %v4614_v59 = vpop.eup %4613  ;;  %v4499_v33 = vld [vmem:[#allocation5 + $0x280] ss:$16 sps:$4 sm:$0xff]   ;;  %v4513_v37 = vld [vmem:[#allocation5 + $0x2c4] ss:$16 sps:$4 sm:$0xff]  }
 0x27c   :  { %v1665_v47 = vadd.f32 %v1654_v29, %v1636_v55  ;;  %v1610_v48 = vmul.f32 %v4614_v59, %v1598_v45  ;;  %v1609_v49 = vmul.f32 %v4614_v59, %v1597_v39  ;;  %v1612_v50 = vmul.f32 %v4614_v59, %v1600_v46  ;;  %v4516_v55 = vld [vmem:[#allocation5 + $0x2cc] ss:$16 sps:$4 sm:$0xff]   ;;  %v4511_v39 = vld [vmem:[#allocation5 + $0x2c0] ss:$16 sps:$4 sm:$0xff]   ;;  %v4519_v45 = vld [vmem:[#allocation5 + $0x2e4] ss:$16 sps:$4 sm:$0xff]  }
 0x27d   :  { %v1611_v53 = vmul.f32 %v4614_v59, %v1599_v42  ;;  %v1664_v54 = vadd.f32 %v1650_v34, %v1635_v36  ;;  %v1663_v56 = vadd.f32 %v1646_v35, %v1634_v52  ;;  %v1666_v5 = vadd.f32 %v1658_v58, %v1637_v57  ;;  %v4505_v36 = vld [vmem:[#allocation5 + $0x2a0] ss:$16 sps:$4 sm:$0xff]   ;;  %v4508_v52 = vld [vmem:[#allocation5 + $0x2a8] ss:$16 sps:$4 sm:$0xff]   ;;  %v4522_v46 = vld [vmem:[#allocation5 + $0x2ec] ss:$16 sps:$4 sm:$0xff]  }
 0x27e   :  { %v1639_v62 = vmul.f32 %v1621_v22, %v1610_v48  ;;  %v1638_v63 = vmul.f32 %v1617_v23, %v1609_v49  ;;  %v1641_v60 = vmul.f32 %v1629_v51, %v1612_v50  ;;  %v1673_v8 = vmax.f32 %v1665_v47, 0.0  ;;  %v4484_v22 = vld [vmem:[#allocation5 + $0x228] ss:$16 sps:$4 sm:$0xff]   ;;  %v4489_v23 = vld [vmem:[#allocation5 + $0x244] ss:$16 sps:$4 sm:$0xff]  }
 0x27f   :  { %v1640_v0 = vmul.f32 %v1625_v27, %v1611_v53  ;;  %v1672_v10 = vmax.f32 %v1664_v54, 0.0  ;;  %v1671_v4 = vmax.f32 %v1663_v56, 0.0  ;;  %v1674_v17 = vmax.f32 %v1666_v5, 0.0  ;;  %v4495_v27 = vld [vmem:[#allocation5 + $0x264] ss:$16 sps:$4 sm:$0xff]  }
 0x280   :  { %v1668_v61 = vadd.f32 %v1650_v34, %v1639_v62  ;;  %v1667_v2 = vadd.f32 %v1646_v35, %v1638_v63  ;;  %v1670_v1 = vadd.f32 %v1658_v58, %v1641_v60  ;;  %v4502_v34 = vld [vmem:[#allocation5 + $0x288] ss:$16 sps:$4 sm:$0xff]   ;;  %v4507_v35 = vld [vmem:[#allocation5 + $0x2a4] ss:$16 sps:$4 sm:$0xff]   ;;  %v4510_v51 = vld [vmem:[#allocation5 + $0x2ac] ss:$16 sps:$4 sm:$0xff]  }
 0x281   :  { %v1669_v3 = vadd.f32 %v1654_v29, %v1640_v0  ;;  %v4493_v29 = vld [vmem:[#allocation5 + $0x260] ss:$16 sps:$4 sm:$0xff]   ;;  %v4514_v42 = vld [vmem:[#allocation5 + $0x2c8] ss:$16 sps:$4 sm:$0xff]   ;;  %v4525_v48 = vld [vmem:[#allocation5 + $0x304] ss:$16 sps:$4 sm:$0xff]  }
 0x282   :  { %v1676_v6 = vmax.f32 %v1668_v61, 0.0  ;;  %v1675_v7 = vmax.f32 %v1667_v2, 0.0  ;;  %v1678_v11 = vmax.f32 %v1670_v1, 0.0  ;;  %v4517_v59 = vld [vmem:[#allocation5 + $0x2e0] ss:$16 sps:$4 sm:$0xff]  }
 0x283   :  { %v1677_v9 = vmax.f32 %v1669_v3, 0.0  ;;  %v4520_v47 = vld [vmem:[#allocation5 + $0x2e8] ss:$16 sps:$4 sm:$0xff]   ;;  %v4528_v49 = vld [vmem:[#allocation5 + $0x30c] ss:$16 sps:$4 sm:$0xff]  }
 0x284   :  { %v1680_v12 = vpack.c.bf16 %v1676_v6, %v1672_v10  ;;  %v1679_v15 = vpack.c.bf16 %v1675_v7, %v1671_v4  ;;  %v1682_v20 = vpack.c.bf16 %v1678_v11, %v1674_v17  ;;  %v4523_v50 = vld [vmem:[#allocation5 + $0x300] ss:$16 sps:$4 sm:$0xff]   ;;  %v4526_v53 = vld [vmem:[#allocation5 + $0x308] ss:$16 sps:$4 sm:$0xff]   ;;  %v4531_v54 = vld [vmem:[#allocation5 + $0x324] ss:$16 sps:$4 sm:$0xff]  }
 0x285   :  { %v4918_v16 = vpack.c.bf16 %v1677_v9, %v1673_v8  ;;  %v4534_v56 = vld [vmem:[#allocation5 + $0x32c] ss:$16 sps:$4 sm:$0xff]   ;;  %v4529_v57 = vld [vmem:[#allocation5 + $0x320] ss:$16 sps:$4 sm:$0xff]   ;;  %v4532_v58 = vld [vmem:[#allocation5 + $0x328] ss:$16 sps:$4 sm:$0xff]  }
 0x286   :  { %2504 = vmatprep.mubr.bf16.mxu0 %v1680_v12  ;;  %2590 = vmatprep.mubr.bf16.mxu1 %v1680_v12  ;;  %v4537_v62 = vld [vmem:[#allocation5 + $0x344] ss:$16 sps:$4 sm:$0xff]   ;;  %v4540_v63 = vld [vmem:[#allocation5 + $0x34c] ss:$16 sps:$4 sm:$0xff]   ;;  %v4535_v60 = vld [vmem:[#allocation5 + $0x340] ss:$16 sps:$4 sm:$0xff]  }
 0x287   :  { %2505 = vmatmul.mubr.bf16.vlgmr.msra.gmra.mrb[4].mxu0 %v1679_v15  ;;  %2591 = vmatmul.mubr.bf16.vlgmr.msra.gmra.mrb[4].mxu1 %v1679_v15  ;;  %v4538_v0 = vld [vmem:[#allocation5 + $0x348] ss:$16 sps:$4 sm:$0xff]   ;;  %v4543_v61 = vld [vmem:[#allocation5 + $0x364] ss:$16 sps:$4 sm:$0xff]   ;;  %v4546_v2 = vld [vmem:[#allocation5 + $0x36c] ss:$16 sps:$4 sm:$0xff]  }
 0x288   :  { %2516 = vmatpush1.bf16.msra.mxu0 %v4475_v13  ;;  %2602 = vmatpush1.bf16.msra.mxu1 %v4478_v14  ;;  %v4541_v1 = vld [vmem:[#allocation5 + $0x360] ss:$16 sps:$4 sm:$0xff]   ;;  %v4544_v3 = vld [vmem:[#allocation5 + $0x368] ss:$16 sps:$4 sm:$0xff]   ;;  %v4549_v10 = vld [vmem:[#allocation5 + $0x384] ss:$16 sps:$4 sm:$0xff]  }
 0x289   :  { %2547 = vmatprep.mubr.bf16.mxu0 %v1682_v20  ;;  %2633 = vmatprep.mubr.bf16.mxu1 %v1682_v20  ;;  %v4552_v4 = vld [vmem:[#allocation5 + $0x38c] ss:$16 sps:$4 sm:$0xff]   ;;  %v4547_v5 = vld [vmem:[#allocation5 + $0x380] ss:$16 sps:$4 sm:$0xff]   ;;  %v4550_v6 = vld [vmem:[#allocation5 + $0x388] ss:$16 sps:$4 sm:$0xff]  }
 0x28a   :  { %2517 = vmatprep.subr.bf16.mxu0 %v4483_v18  ;;  %2603 = vmatprep.subr.bf16.mxu1 %v4486_v19  ;;  %v4555_v7 = vld [vmem:[#allocation5 + $0x3a4] ss:$16 sps:$4 sm:$0xff]   ;;  %v4558_v8 = vld [vmem:[#allocation5 + $0x3ac] ss:$16 sps:$4 sm:$0xff]   ;;  %v4553_v9 = vld [vmem:[#allocation5 + $0x3a0] ss:$16 sps:$4 sm:$0xff]  }
 0x28b   :  { %v4556_v11 = vld [vmem:[#allocation5 + $0x3a8] ss:$16 sps:$4 sm:$0xff]   ;;  %v4561_v12 = vld [vmem:[#allocation5 + $0x3c4] ss:$16 sps:$4 sm:$0xff]   ;;  %v4564_v13 = vld [vmem:[#allocation5 + $0x3cc] ss:$16 sps:$4 sm:$0xff]  }
 0x28c   :  { %2518 = vmatpush1.bf16.msra.mxu0 %v4481_v21  ;;  %2604 = vmatpush1.bf16.msra.mxu1 %v4484_v22  ;;  %v4559_v14 = vld [vmem:[#allocation5 + $0x3c0] ss:$16 sps:$4 sm:$0xff]   ;;  %v4562_v15 = vld [vmem:[#allocation5 + $0x3c8] ss:$16 sps:$4 sm:$0xff]   ;;  %v4567_v17 = vld [vmem:[#allocation5 + $0x3e4] ss:$16 sps:$4 sm:$0xff]  }
 0x28d   :  { %2519 = vmatprep.subr.bf16.mxu0 %v4489_v23  ;;  %2605 = vmatprep.subr.bf16.mxu1 %v4492_v24  ;;  %v4570_v18 = vld [vmem:[#allocation5 + $0x3ec] ss:$16 sps:$4 sm:$0xff]   ;;  %v4565_v19 = vld [vmem:[#allocation5 + $0x3e0] ss:$16 sps:$4 sm:$0xff]   ;;  %v4568_v20 = vld [vmem:[#allocation5 + $0x3e8] ss:$16 sps:$4 sm:$0xff]  }
 0x28e   :  { %v3540_v21 = vld [vmem:[%s5079_s6 + $0x3] ss:$8 sm:$0xf] }
 0x28f   :  { %v1815_v22 = vrot.slane %v3540_v21, %v4841_v40  ;;  %v1823_v23 = vrot.slane %v3540_v21, %v4843_v41  ;;  %v1819_v24 = vrot.slane %v3540_v21, %v4848_v43 }
 0x290   :  { %2520 = vmatpush1.bf16.msra.mxu0 %v4487_v25  ;;  %2606 = vmatpush1.bf16.msra.mxu1 %v4490_v26 }
 0x291   :  { %2521 = vmatprep.subr.bf16.mxu0 %v4495_v27  ;;  %2607 = vmatprep.subr.bf16.mxu1 %v4498_v28 }
 0x294   :  { %2522 = vmatpush1.bf16.msra.mxu0 %v4493_v29  ;;  %2608 = vmatpush1.bf16.msra.mxu1 %v4496_v30  ;;  %v1827_v30 = vrot.slane %v3540_v21, %v4850_v44  ;;  %v4589_v21 = vld [vmem:[#allocation7 + $0x20] sm:$0xff]  }
 0x295   :  { %2523 = vmatprep.subr.bf16.mxu0 %v4501_v31  ;;  %2609 = vmatprep.subr.bf16.mxu1 %v4504_v32 }
 0x298   :  { %2524 = vmatpush1.bf16.msra.mxu0 %v4499_v33  ;;  %2610 = vmatpush1.bf16.msra.mxu1 %v4502_v34 }
 0x299   :  { %2525 = vmatprep.subr.bf16.mxu0 %v4507_v35  ;;  %2611 = vmatprep.subr.bf16.mxu1 %v4510_v51 }
 0x29c   :  { %2526 = vmatpush1.bf16.msra.mxu0 %v4505_v36  ;;  %2612 = vmatpush1.bf16.msra.mxu1 %v4508_v52 }
 0x29d   :  { %2527 = vmatprep.subr.bf16.mxu0 %v4513_v37  ;;  %2613 = vmatprep.subr.bf16.mxu1 %v4516_v55 }
 0x2a0   :  { %2528 = vmatpush1.bf16.msra.mxu0 %v4511_v39  ;;  %2614 = vmatpush1.bf16.msra.mxu1 %v4514_v42 }
 0x2a1   :  { %2529 = vmatprep.subr.bf16.mxu0 %v4519_v45  ;;  %2615 = vmatprep.subr.bf16.mxu1 %v4522_v46 }
 0x2a4   :  { %2530 = vmatpush1.bf16.msra.mxu0 %v4517_v59  ;;  %2616 = vmatpush1.bf16.msra.mxu1 %v4520_v47 }
 0x2a5   :  { %2531 = vmatprep.subr.bf16.mxu0 %v4525_v48  ;;  %2617 = vmatprep.subr.bf16.mxu1 %v4528_v49 }
 0x2a8   :  { %2532 = vmatpush1.bf16.msra.mxu0 %v4523_v50  ;;  %2618 = vmatpush1.bf16.msra.mxu1 %v4526_v53 }
 0x2a9   :  { %2533 = vmatprep.subr.bf16.mxu0 %v4531_v54  ;;  %2619 = vmatprep.subr.bf16.mxu1 %v4534_v56 }
 0x2ac   :  { %2534 = vmatpush1.bf16.msra.mxu0 %v4529_v57  ;;  %2620 = vmatpush1.bf16.msra.mxu1 %v4532_v58 }
 0x2ad   :  { %2535 = vmatprep.subr.bf16.mxu0 %v4537_v62  ;;  %2621 = vmatprep.subr.bf16.mxu1 %v4540_v63 }
 0x2b0   :  { %2536 = vmatpush1.bf16.msra.mxu0 %v4535_v60  ;;  %2622 = vmatpush1.bf16.msra.mxu1 %v4538_v0 }
 0x2b1   :  { %2537 = vmatprep.subr.bf16.mxu0 %v4543_v61  ;;  %2623 = vmatprep.subr.bf16.mxu1 %v4546_v2 }
 0x2b4   :  { %2538 = vmatpush1.bf16.msra.mxu0 %v4541_v1  ;;  %2624 = vmatpush1.bf16.msra.mxu1 %v4544_v3  ;;  %v4571_v1 = vld [vmem:[#allocation7 + $0x40] sm:$0xff]  }
 0x2b5   :  { %2539 = vmatprep.subr.bf16.mxu0 %v4549_v10  ;;  %2625 = vmatprep.subr.bf16.mxu1 %v4552_v4  ;;  %v4572_v3 = vld [vmem:[#allocation7 + $0xc0] sm:$0xff]  }
 0x2b6   :  { %v4573_v10 = vld [vmem:[#allocation7] sm:$0xff]  }
 0x2b7   :  { %v4574_v4 = vld [vmem:[#allocation7 + $0x80] sm:$0xff]  }
 0x2b8   :  { %2540 = vmatpush1.bf16.msra.mxu0 %v4547_v5  ;;  %2626 = vmatpush1.bf16.msra.mxu1 %v4550_v6  ;;  %v4575_v5 = vld [vmem:[#allocation7 + $0x48] sm:$0xff]  }
 0x2b9   :  { %2541 = vmatprep.subr.bf16.mxu0 %v4555_v7  ;;  %2627 = vmatprep.subr.bf16.mxu1 %v4558_v8  ;;  %v4576_v6 = vld [vmem:[#allocation7 + $0xc8] sm:$0xff]  }
 0x2ba   :  { %v4577_v7 = vld [vmem:[#allocation7 + $0x8] sm:$0xff]  }
 0x2bb   :  { %v4578_v8 = vld [vmem:[#allocation7 + $0x88] sm:$0xff]  }
 0x2bc   :  { %2542 = vmatpush1.bf16.msra.mxu0 %v4553_v9  ;;  %2628 = vmatpush1.bf16.msra.mxu1 %v4556_v11  ;;  %v4579_v9 = vld [vmem:[#allocation7 + $0x50] sm:$0xff]  }
 0x2bd   :  { %2543 = vmatprep.subr.bf16.mxu0 %v4561_v12  ;;  %2629 = vmatprep.subr.bf16.mxu1 %v4564_v13  ;;  %v4580_v11 = vld [vmem:[#allocation7 + $0xd0] sm:$0xff]  }
 0x2be   :  { %v4581_v12 = vld [vmem:[#allocation7 + $0x10] sm:$0xff]  }
 0x2bf   :  { %v4582_v13 = vld [vmem:[#allocation7 + $0x90] sm:$0xff]  }
 0x2c0   :  { %2544 = vmatpush1.bf16.msra.mxu0 %v4559_v14  ;;  %2630 = vmatpush1.bf16.msra.mxu1 %v4562_v15  ;;  %v4583_v14 = vld [vmem:[#allocation7 + $0x58] sm:$0xff]  }
 0x2c1   :  { %2545 = vmatprep.subr.bf16.mxu0 %v4567_v17  ;;  %2631 = vmatprep.subr.bf16.mxu1 %v4570_v18  ;;  %v4584_v15 = vld [vmem:[#allocation7 + $0xd8] sm:$0xff]  }
 0x2c2   :  { %v4585_v17 = vld [vmem:[#allocation7 + $0x18] sm:$0xff]  }
 0x2c3   :  { %v4586_v18 = vld [vmem:[#allocation7 + $0x98] sm:$0xff]  }
 0x2c4   :  { %2546 = vmatpush1.bf16.msra.mxu0 %v4565_v19  ;;  %2632 = vmatpush1.bf16.msra.mxu1 %v4568_v20  ;;  %v4587_v19 = vld [vmem:[#allocation7 + $0x60] sm:$0xff]  }
 0x2c5   :  { %3920 = vmatprep.subr.bf16.mxu0 %v4571_v1  ;;  %3942 = vmatprep.subr.bf16.mxu1 %v4572_v3  ;;  %v4588_v20 = vld [vmem:[#allocation7 + $0xe0] sm:$0xff]  }
 0x2c7   :  { %2548 = vmatmul.mubr.bf16.vlgmr.msra.gmra.mrb[4].mxu0 %v4918_v16  ;;  %2634 = vmatmul.mubr.bf16.vlgmr.msra.gmra.mrb[4].mxu1 %v4918_v16 }
 0x2c8   :  { %3921 = vmatpush3.bf16.msra.mxu0 %v4573_v10  ;;  %3943 = vmatpush3.bf16.msra.mxu1 %v4574_v4 }
 0x2c9   :  { %3922 = vmatprep.subr.bf16.mxu0 %v4575_v5  ;;  %3944 = vmatprep.subr.bf16.mxu1 %v4576_v6 }
 0x2cc   :  { %3923 = vmatpush3.bf16.msra.mxu0 %v4577_v7  ;;  %3945 = vmatpush3.bf16.msra.mxu1 %v4578_v8 }
 0x2cd   :  { %3924 = vmatprep.subr.bf16.mxu0 %v4579_v9  ;;  %3946 = vmatprep.subr.bf16.mxu1 %v4580_v11 }
 0x2d0   :  { %3925 = vmatpush3.bf16.msra.mxu0 %v4581_v12  ;;  %3947 = vmatpush3.bf16.msra.mxu1 %v4582_v13 }
 0x2d1   :  { %3926 = vmatprep.subr.bf16.mxu0 %v4583_v14  ;;  %3948 = vmatprep.subr.bf16.mxu1 %v4584_v15 }
 0x2d4   :  { %3927 = vmatpush3.bf16.msra.mxu0 %v4585_v17  ;;  %3949 = vmatpush3.bf16.msra.mxu1 %v4586_v18 }
 0x2d5   :  { %3928 = vmatprep.subr.bf16.mxu0 %v4587_v19  ;;  %3950 = vmatprep.subr.bf16.mxu1 %v4588_v20 }
 0x2d8   :  { %3929 = vmatpush3.bf16.msra.mxu0 %v4589_v21 }
 0x39a   :  { %v2549_v25 = vpop.f32.mrb[4].mxu0  ;;  %v2635_v26 = vpop.f32.mrb[4].mxu1 }
 0x39b   :  { %v4928_v27 = vadd.f32 %v2549_v25, %v1815_v22  ;;  %v4930_v28 = vadd.f32 %v2635_v26, %v1823_v23  ;;  %v2551_v29 = vpop.f32.mrb[5].mxu0  ;;  %v2637_v16 = vpop.f32.mrb[5].mxu1  ;;  %v4593_v25 = vld [vmem:[#allocation7 + $0x28] sm:$0xff]  }
 0x39c   :  { %v4933_v31 = vadd.f32 %v2551_v29, %v1819_v24  ;;  %v2553_v32 = vpop.f32.mrb[6].mxu0  ;;  %v2639_v33 = vpop.f32.mrb[6].mxu1  ;;  %v4949_v45 = vadd.f32 %v2637_v16, %v1827_v30  ;;  %v4594_v26 = vld [vmem:[#allocation7 + $0xa8] sm:$0xff]   ;;  %v4595_v29 = vld [vmem:[#allocation7 + $0x70] sm:$0xff]  }
 0x39d   :  { %v2656_v34 = vmul.f32 %v4928_v27, %v4928_v27  ;;  %v4937_v35 = vadd.f32 %v2553_v32, %v1815_v22  ;;  %v4939_v51 = vadd.f32 %v2639_v33, %v1823_v23  ;;  %v2555_v36 = vpop.f32.mrb[7].mxu0  ;;  %v2641_v52 = vpop.f32.mrb[7].mxu1  ;;  %v2658_v42 = vmul.f32 %v4930_v28, %v4930_v28  ;;  %v4590_v22 = vld [vmem:[#allocation7 + $0xa0] sm:$0xff]   ;;  %v4591_v23 = vld [vmem:[#allocation7 + $0x68] sm:$0xff]   ;;  %v4597_v16 = vld [vmem:[#allocation7 + $0x30] sm:$0xff]  }
 0x39e   :  { %v2644_v37 = vadd.f32 %v4933_v31, %v4928_v27  ;;  %v2657_v55 = vmul.f32 %v4933_v31, %v4933_v31  ;;  %v4945_v39 = vadd.f32 %v2555_v36, %v1819_v24  ;;  %v4960_v53 = vadd.f32 %v2641_v52, %v1827_v30  ;;  %v4592_v24 = vld [vmem:[#allocation7 + $0xe8] sm:$0xff]   ;;  %3951 = vmatpush3.bf16.msra.mxu1 %v4590_v22  ;;  %v4596_v30 = vld [vmem:[#allocation7 + $0xf0] sm:$0xff]   ;;  %v4599_v33 = vld [vmem:[#allocation7 + $0x78] sm:$0xff]  }
 0x39f   :  { %v2660_v46 = vmul.f32 %v4937_v35, %v4937_v35  ;;  %v2662_v50 = vmul.f32 %v4939_v51, %v4939_v51  ;;  %v2659_v63 = vmul.f32 %v4949_v45, %v4949_v45  ;;  %3930 = vmatprep.subr.bf16.mxu0 %v4591_v23  ;;  %3952 = vmatprep.subr.bf16.mxu1 %v4592_v24  ;;  %v4598_v32 = vld [vmem:[#allocation7 + $0xb0] sm:$0xff]   ;;  %v4601_v36 = vld [vmem:[#allocation7 + $0x38] sm:$0xff]  }
 0x3a0   :  { %v2649_v59 = vadd.f32 %v4945_v39, %v4937_v35  ;;  %v2661_v47 = vmul.f32 %v4945_v39, %v4945_v39  ;;  %v2645_v48 = vadd.f32 %v4930_v28, %v2644_v37  ;;  %v2664_v49 = vadd.f32 %v2657_v55, %v2656_v34  ;;  %3931 = vmatpush3.bf16.msra.mxu0 %v4593_v25  ;;  %v4600_v34 = vld [vmem:[#allocation7 + $0xf8] sm:$0xff]  }
 0x3a1   :  { %v2663_v61 = vmul.f32 %v4960_v53, %v4960_v53  ;;  %3932 = vmatprep.subr.bf16.mxu0 %v4595_v29  ;;  %v4602_v52 = vld [vmem:[#allocation7 + $0xb8] sm:$0xff]  }
 0x3a2   :  { %v2646_v54 = vadd.f32 %v4949_v45, %v2645_v48  ;;  %v2650_v56 = vadd.f32 %v4939_v51, %v2649_v59  ;;  %v2665_v57 = vadd.f32 %v2664_v49, %v2658_v42  ;;  %v2669_v58 = vadd.f32 %v2661_v47, %v2660_v46  ;;  %3953 = vmatpush3.bf16.msra.mxu1 %v4594_v26 }
 0x3a3   :  { %3954 = vmatprep.subr.bf16.mxu1 %v4596_v30 }
 0x3a4   :  { %2647 = vadd.xlane.f32.xlu0 %v2646_v54  ;;  %v2651_v62 = vadd.f32 %v4960_v53, %v2650_v56  ;;  %v2670_v60 = vadd.f32 %v2669_v58, %v2662_v50  ;;  %v2666_v0 = vadd.f32 %v2665_v57, %v2659_v63  ;;  %3933 = vmatpush3.bf16.msra.mxu0 %v4597_v16 }
 0x3a5   :  { %3934 = vmatprep.subr.bf16.mxu0 %v4599_v33 }
 0x3a6   :  { %2652 = vadd.xlane.f32.xlu1 %v2651_v62  ;;  %v2671_v2 = vadd.f32 %v2670_v60, %v2663_v61  ;;  %3955 = vmatpush3.bf16.msra.mxu1 %v4598_v32  ;;  %v3542_v61 = vld [vmem:[%s5079_s6 + $0x5] ss:$8 sm:$0xf] }
 0x3a7   :  { %3956 = vmatprep.subr.bf16.mxu1 %v4600_v34  ;;  %v2739_v11 = vrot.slane %v3542_v61, %v4848_v43  ;;  %v2747_v13 = vrot.slane %v3542_v61, %v4850_v44  ;;  %v2743_v19 = vrot.slane %v3542_v61, %v4843_v41 }
 0x3a8   :  { %2667 = vadd.xlane.f32.xlu0 %v2666_v0  ;;  %3935 = vmatpush3.bf16.msra.mxu0 %v4601_v36  ;;  %v3541_v0 = vld [vmem:[%s5079_s6 + $0x4] ss:$8 sm:$0xf] }
 0x3a9   :  { %v2718_v1 = vrot.slane %v3541_v0, %v4850_v44  ;;  %v2706_v3 = vrot.slane %v3541_v0, %v4841_v40  ;;  %v2714_v10 = vrot.slane %v3541_v0, %v4843_v41 }
 0x3aa   :  { %2672 = vadd.xlane.f32.xlu1 %v2671_v2  ;;  %3957 = vmatpush3.bf16.msra.mxu1 %v4602_v52  ;;  %v2710_v2 = vrot.slane %v3541_v0, %v4848_v43 }
 0x431   :  { %v2648_v37 = vpop.xlane.xlu0 %2647 }
 0x432   :  { %v2654_v55 = vmul.f32 0.001953125, %v2648_v37 }
 0x433   :  { %v2653_v42 = vpop.xlane.xlu1 %2652 }
 0x434   :  { %v2655_v46 = vmul.f32 0.001953125, %v2653_v42  ;;  %v2676_v47 = vmul.f32 %v2654_v55, %v2654_v55  ;;  %v2682_v4 = vsub.f32 %v4928_v27, %v2654_v55  ;;  %v2684_v5 = vsub.f32 %v4930_v28, %v2654_v55 }
 0x435   :  { %v2668_v59 = vpop.xlane.xlu0 %2667  ;;  %v2683_v6 = vsub.f32 %v4933_v31, %v2654_v55  ;;  %v2685_v7 = vsub.f32 %v4949_v45, %v2654_v55  ;;  %v2735_v45 = vrot.slane %v3542_v61, %v4841_v40 }
 0x436   :  { %v2674_v48 = vmul.f32 0.001953125, %v2668_v59  ;;  %v2677_v54 = vmul.f32 %v2655_v46, %v2655_v46  ;;  %v2687_v9 = vsub.f32 %v4945_v39, %v2655_v46  ;;  %v2689_v12 = vsub.f32 %v4960_v53, %v2655_v46 }
 0x437   :  { %v2673_v49 = vpop.xlane.xlu1 %2672  ;;  %v2686_v28 = vsub.f32 %v4937_v35, %v2655_v46  ;;  %v2688_v31 = vsub.f32 %v4939_v51, %v2655_v46 }
 0x438   :  { %v2678_v50 = vsub.f32 %v2674_v48, %v2676_v47  ;;  %v2675_v56 = vmul.f32 0.001953125, %v2673_v49 }
 0x43a   :  { %v2680_v57 = vmax.f32 %v2678_v50, 0.0  ;;  %v2679_v58 = vsub.f32 %v2675_v56, %v2677_v54 }
 0x43c   :  { %v2690_v62 = vadd.f32 1e-05, %v2680_v57  ;;  %v2681_v63 = vmax.f32 %v2679_v58, 0.0  ;;  %v3869_v57 = vld [vmem:[%s5080_s7] ss:$0 sm:$0xff] }
 0x43e   :  { %4615 = vrsqrt.f32 %v2690_v62  ;;  %v2691_v60 = vadd.f32 1e-05, %v2681_v63 }
 0x440   :  { %4617 = vrsqrt.f32 %v2691_v60 }
 0x448   :  { %v4616_v8 = vpop.eup %4615 }
 0x449   :  { %v2695_v14 = vmul.f32 %v4616_v8, %v2683_v6  ;;  %v2697_v15 = vmul.f32 %v4616_v8, %v2685_v7  ;;  %v2694_v17 = vmul.f32 %v4616_v8, %v2682_v4  ;;  %v2696_v18 = vmul.f32 %v4616_v8, %v2684_v5 }
 0x44a   :  { %v4618_v27 = vpop.eup %4617 }
 0x44b   :  { %v2699_v39 = vmul.f32 %v4618_v27, %v2687_v9  ;;  %v2724_v20 = vmul.f32 %v2710_v2, %v2695_v14  ;;  %v2701_v43 = vmul.f32 %v4618_v27, %v2689_v12  ;;  %v2726_v21 = vmul.f32 %v2718_v1, %v2697_v15  ;;  %v4605_v14 = vld [vmem:[%s5078_s5 + $0x10] sm:$0xff]   ;;  %v4606_v15 = vld [vmem:[%s5078_s5 + $0x18] sm:$0xff]  }
 0x44c   :  { %v2698_v53 = vmul.f32 %v4618_v27, %v2686_v28  ;;  %v2723_v22 = vmul.f32 %v2706_v3, %v2694_v17  ;;  %v2700_v44 = vmul.f32 %v4618_v27, %v2688_v31  ;;  %v2725_v23 = vmul.f32 %v2714_v10, %v2696_v18  ;;  %v4607_v17 = vld [vmem:[%s5078_s5 + $0x20] sm:$0xff]   ;;  %v4608_v18 = vld [vmem:[%s5078_s5 + $0x28] sm:$0xff]   ;;  %v4609_v27 = vld [vmem:[%s5078_s5 + $0x30] sm:$0xff]  }
 0x44d   :  { %v2728_v24 = vmul.f32 %v2710_v2, %v2699_v39  ;;  %v2753_v25 = vadd.f32 %v2739_v11, %v2724_v20  ;;  %v2730_v26 = vmul.f32 %v2718_v1, %v2701_v43  ;;  %v2755_v29 = vadd.f32 %v2747_v13, %v2726_v21  ;;  %v4610_v28 = vld [vmem:[%s5078_s5 + $0x38] sm:$0xff]   ;;  %v3267_v31 = vld [vmem:[%s5074_s1] sm:$0xff] }
 0x44e   :  { %v2727_v30 = vmul.f32 %v2706_v3, %v2698_v53  ;;  %v2752_v35 = vadd.f32 %v2735_v45, %v2723_v22  ;;  %v2729_v16 = vmul.f32 %v2714_v10, %v2700_v44  ;;  %v2754_v51 = vadd.f32 %v2743_v19, %v2725_v23 }
 0x44f   :  { %v2757_v32 = vadd.f32 %v2739_v11, %v2728_v24  ;;  %v2759_v40 = vadd.f32 %v2747_v13, %v2730_v26  ;;  %v2761_v34 = vmax.f32 %v2753_v25, 0.0  ;;  %v2763_v52 = vmax.f32 %v2755_v29, 0.0  ;;  %v4603_v11 = vld [vmem:[%s5078_s5] sm:$0xff]   ;;  %v4604_v13 = vld [vmem:[%s5078_s5 + $0x8] sm:$0xff]  }
 0x450   :  { %v2756_v33 = vadd.f32 %v2735_v45, %v2727_v30  ;;  %v2758_v41 = vadd.f32 %v2743_v19, %v2729_v16  ;;  %v2760_v55 = vmax.f32 %v2752_v35, 0.0  ;;  %v2762_v46 = vmax.f32 %v2754_v51, 0.0 }
 0x451   :  { %v2765_v36 = vmax.f32 %v2757_v32, 0.0  ;;  %v2767_v37 = vmax.f32 %v2759_v40, 0.0  ;;  %v4728_v12 = vmov 0.0   ;;  %v4730_v45 = vmov 0   ;;  %v3902_v40 = vld [vmem:[%s5080_s7 + $0x1] ss:$0 sm:$0xff] }
 0x452   :  { %v2764_v42 = vmax.f32 %v2756_v33, 0.0  ;;  %v2766_v59 = vmax.f32 %v2758_v41, 0.0  ;;  %3983 = vmatprep.subr.bf16.mxu0 %v4728_v12  ;;  %4081 = vset.pattern.permute.xlu0 %v4730_v45 }
 0x453   :  { %v2769_v47 = vpack.c.bf16 %v2765_v36, %v2761_v34  ;;  %v2771_v48 = vpack.c.bf16 %v2767_v37, %v2763_v52  ;;  %v3903_v36 = vld [vmem:[%s5080_s7 + $0x2] ss:$0 sm:$0xff] }
 0x454   :  { %v2768_v49 = vpack.c.bf16 %v2764_v42, %v2760_v55  ;;  %v2770_v50 = vpack.c.bf16 %v2766_v59, %v2762_v46 }
 0x455   :  { %3064 = vmatprep.mubr.bf16.mxu0 %v2769_v47  ;;  %3105 = vmatprep.mubr.bf16.mxu1 %v2771_v48 }
 0x456   :  { %3065 = vmatmul.mubr.bf16.vlgmr.msra.gmra.mrb[8].mxu0 %v2768_v49  ;;  %3106 = vmatmul.mubr.bf16.vlgmr.msra.gmra.mrb[8].mxu1 %v2770_v50  ;;  %v3904_v49 = vld [vmem:[%s5080_s7 + $0x3] ss:$0 sm:$0xff]  ;;  %v3269_v50 = vand.u32 127, %v286_v38  ;;  %s4733_s7 = smov [#allocation8]  }
 0x457   :  { %3984 = vmatpush3.bf16.msra.mxu0 %v4603_v11  ;;  %3999 = vmatprep.mubr.msk.bf16.mxu0 %vm4729_vm0, %v4728_v12  ;;  %s3528_s20 = sshll.u32 %s4733_s7, 4  ;;  %s3529_s20 = int_to_ptr.vmem [resolvable:$true] %s3528_s20 }
 0x458   :  { %3985 = vmatprep.subr.bf16.mxu0 %v4728_v12  ;;  %s4693_s2 = scalar_lea.vmem %s3529_s20, 128  ;;  %p4698_p11 = scmp.lt.s32.totalorder %s3529_s20, %s3529_s20 }
 0x459   :  { %p4694_p10 = scmp.ne.s32.totalorder %s3529_s20, %s4693_s2  ;;  %p4699_p12 = scmp.lt.s32.totalorder %s4693_s2, %s4693_s2 }
 0x45b   :  { %3986 = vmatpush3.bf16.msra.mxu0 %v4604_v13  ;;  %p4700_p13 = por %p4699_p12, %p4698_p11 }
 0x45c   :  { %3987 = vmatprep.subr.bf16.mxu0 %v4728_v12 }
 0x45d   :  { %p4701_p0 = pnand %p4700_p13, %p4694_p10 }
 0x45f   :  { %3988 = vmatpush3.bf16.msra.mxu0 %v4605_v14 }
 0x460   :  { %3989 = vmatprep.subr.bf16.mxu0 %v4728_v12 }
 0x463   :  { %3990 = vmatpush3.bf16.msra.mxu0 %v4606_v15 }
 0x464   :  { %3991 = vmatprep.subr.bf16.mxu0 %v4728_v12 }
 0x467   :  { %3992 = vmatpush3.bf16.msra.mxu0 %v4607_v17 }
 0x468   :  { %3993 = vmatprep.subr.bf16.mxu0 %v4728_v12 }
 0x46b   :  { %3994 = vmatpush3.bf16.msra.mxu0 %v4608_v18 }
 0x46c   :  { %3995 = vmatprep.subr.bf16.mxu0 %v4728_v12 }
 0x46f   :  { %3996 = vmatpush3.bf16.msra.mxu0 %v4609_v27 }
 0x470   :  { %3997 = vmatprep.subr.bf16.mxu0 %v4728_v12 }
 0x473   :  { %3998 = vmatpush3.bf16.msra.mxu0 %v4610_v28 }
 0x529   :  { %v3936_v54 = vpop.f32.mrb[8].mxu0  ;;  %v3958_v56 = vpop.f32.mrb[8].mxu1 }
 0x52a   :  { %v3937_v58 = vpop.f32.mrb[9].mxu0  ;;  %v3959_v62 = vpop.f32.mrb[9].mxu1 }
 0x52b   :  { %v3938_v63 = vadd.f32 %v3937_v58, %v3936_v54  ;;  %v3960_v60 = vadd.f32 %v3959_v62, %v3958_v56  ;;  %v3939_v0 = vpop.f32.mrb[10].mxu0  ;;  %v3961_v61 = vpop.f32.mrb[10].mxu1 }
 0x52c   :  { %v3940_v2 = vpop.f32.mrb[11].mxu0  ;;  %v3962_v1 = vpop.f32.mrb[11].mxu1 }
 0x52d   :  { %v3067_v3 = vadd.f32 %v3938_v63, %v3869_v57  ;;  %v3941_v10 = vadd.f32 %v3940_v2, %v3939_v0  ;;  %v3963_v4 = vadd.f32 %v3962_v1, %v3961_v61  ;;  %v4731_v0 = vmov 1.0  }
 0x52f   :  { %v4994_v5 = vadd.f32 %v3960_v60, %v3067_v3  ;;  %v3070_v6 = vadd.f32 %v3941_v10, %v3869_v57 }
 0x531   :  { %v4996_v7 = vadd.f32 %v3963_v4, %v3070_v6  ;;  %3114 = vadd.xlane.f32.xlu0 %v4994_v5  ;;  %v3121_v8 = vmul.f32 %v4994_v5, %v4994_v5  ;;  %v4732_v4 = vmov 0.0|0.0  }
 0x533   :  { %3116 = vadd.xlane.f32.xlu1 %v4996_v7  ;;  %v3122_v9 = vmul.f32 %v4996_v7, %v4996_v7 }
 0x535   :  { %3123 = vadd.xlane.f32.xlu0 %v3121_v8 }
 0x537   :  { %3125 = vadd.xlane.f32.xlu1 %v3122_v9 }
 0x54b   :  { %3271 = vperm.xlu0 %4081, %v3267_v31  }
 0x5be   :  { %v3115_v19 = vpop.xlane.xlu0 %3114 }
 0x5bf   :  { %v3119_v39 = vmul.f32 0.0078125, %v3115_v19 }
 0x5c0   :  { %v3117_v20 = vpop.xlane.xlu1 %3116 }
 0x5c1   :  { %v3120_v43 = vmul.f32 0.0078125, %v3117_v20  ;;  %v3129_v53 = vmul.f32 %v3119_v39, %v3119_v39  ;;  %v3135_v51 = vsub.f32 %v4994_v5, %v3119_v39 }
 0x5c2   :  { %v3124_v21 = vpop.xlane.xlu0 %3123 }
 0x5c3   :  { %v3127_v22 = vmul.f32 0.0078125, %v3124_v21  ;;  %v3130_v23 = vmul.f32 %v3120_v43, %v3120_v43  ;;  %v3136_v33 = vsub.f32 %v4996_v7, %v3120_v43 }
 0x5c4   :  { %v3126_v44 = vpop.xlane.xlu1 %3125 }
 0x5c5   :  { %v3131_v24 = vsub.f32 %v3127_v22, %v3129_v53  ;;  %v3128_v25 = vmul.f32 0.0078125, %v3126_v44 }
 0x5c7   :  { %v3133_v26 = vmax.f32 %v3131_v24, 0.0  ;;  %v3132_v29 = vsub.f32 %v3128_v25, %v3130_v23 }
 0x5c9   :  { %v3137_v30 = vadd.f32 1e-05, %v3133_v26  ;;  %v3134_v35 = vmax.f32 %v3132_v29, 0.0 }
 0x5ca   :  { %v3272_v56 = vpop.permute.xlu0 %3271 }
 0x5cb   :  { %4619 = vrsqrt.f32 %v3137_v30  ;;  %v3138_v16 = vadd.f32 1e-05, %v3134_v35  ;;  %vm3273_vm1 = vcmp.eq.s32.totalorder %v3272_v56, %v3269_v50 }
 0x5cc   :  { %4003 = vmatprep.subr.msk.mxu1 %vm3273_vm1, %v4731_v0  ;;  %v3913_v5 = vsel %vm3273_vm1, 1.0, %v4728_v12 }
 0x5cd   :  { %4621 = vrsqrt.f32 %v3138_v16  ;;  %4004 = vmatpush3.msk.msra.mxu1 %vm3273_vm1, %v4731_v0  ;;  %v3276_v6 = vrot.slane %v3913_v5, 4 }
 0x5ce   :  { %4022 = vmatprep.subr.bf16.mxu1 %v4732_v4 }
 0x5cf   :  { %v3277_v7 = vadd.f32 %v3913_v5, %v3276_v6 }
 0x5d1   :  { %v3278_v8 = vrot.slane %v3277_v7, 2 }
 0x5d3   :  { %v3279_v9 = vadd.f32 %v3278_v8, %v3277_v7 }
 0x5d5   :  { %v4620_v32 = vpop.eup %4619  ;;  %v3280_v11 = vrot.slane %v3279_v9, 1 }
 0x5d6   :  { %v3141_v41 = vmul.f32 %v4620_v32, %v3135_v51 }
 0x5d7   :  { %v4622_v34 = vpop.eup %4621  ;;  %v3281_v13 = vadd.f32 %v3280_v11, %v3279_v9 }
 0x5d8   :  { %v3142_v52 = vmul.f32 %v4622_v34, %v3136_v33  ;;  %v3147_v37 = vmul.f32 %v3902_v40, %v3141_v41 }
 0x5d9   :  { %v3412_v14 = vmax.f32 %v3281_v13, 1.0 }
 0x5da   :  { %v3148_v55 = vmul.f32 %v3902_v40, %v3142_v52  ;;  %v3153_v42 = vadd.f32 %v3903_v36, %v3147_v37 }
 0x5db   :  { %4623 = vrcp.f32 %v3412_v14 }
 0x5dc   :  { %v3154_v46 = vadd.f32 %v3903_v36, %v3148_v55  ;;  %v3155_v59 = vmax.f32 %v3153_v42, 0.0 }
 0x5de   :  { %v3156_v47 = vmax.f32 %v3154_v46, 0.0 }
 0x5e0   :  { %v3157_v48 = vpack.c.bf16 %v3156_v47, %v3155_v59 }
 0x5e2   :  { %4000 = vmatmul.mubr.bf16.vlgmr.msra.gmra.mrb[12].mxu0 %v3157_v48 }
 0x5e5   :  { %v4624_v15 = vpop.eup %4623 }
 0x6b5   :  { %v3260_v54 = vpop.f32.mrb[12].mxu0 }
 0x6b6   :  { %v3261_v57 = vadd.f32 %v3904_v49, %v3260_v54  ;;  %v4001_v58 = vpop.f32.mrb[13].mxu0 }
 0x6b7   :  { %v3263_v62 = vpop.f32.mrb[14].mxu0 }
 0x6b8   :  { %v3264_v63 = vadd.f32 %v3904_v49, %v3263_v62  ;;  %3282 = vxpose.xlu1.b32.start.end [1/1] (short) (narrow) %v3261_v57, 32  ;;  %v4002_v60 = vpop.f32.mrb[15].mxu0 }
 0x6ba   :  { %v3418_v61 = vmul.f32 %v3264_v63, %v3264_v63 }
 0x6bc   :  { %v3420_v2 = vsel %vm3419_vm2, %v3418_v61, 0.0 }
 0x6bd   :  { %3421 = vadd.xlane.f32.xlu0 %v3420_v2 }
 0x738   :  { %v3298_v38 = vpop.trf.xlu1 }
 0x739   :  { %4005 = vmatprep.mubr.msk.f32.mxu1 %vm3314_vm3, %v3298_v38 }
 0x73c   :  { %v3299_v1 = vpop.trf.xlu1 }
 0x73d   :  { %4006 = vmatmul.mubr.msk.f32.vlgmr.msra.gmra.mrb[12].mxu1 %vm3314_vm3, %v3299_v1 }
 0x740   :  { %v3300_v3 = vpop.trf.xlu1 }
 0x741   :  { %4008 = vmatprep.mubr.msk.f32.mxu1 %vm3314_vm3, %v3300_v3 }
 0x744   :  { %v3301_v10 = vpop.trf.xlu1 }
 0x745   :  { %4009 = vmatmul.mubr.msk.f32.gmra.mrb[14].mxu1 %vm3314_vm3, %v3301_v10 }
 0x746   :  { %4019 = vmatprep.mubr.msk.f32.mxu1 %vm4729_vm0, %v4728_v12 }
 0x74a   :  { %v3422_v51 = vpop.xlane.xlu0 %3421 }
 0x810   :  { %v4007_v17 = vpop.f32.mrb[12].mxu1 }
 0x811   :  { %v3415_v18 = vmul.f32 %v4624_v15, %v4007_v17  ;;  %v3393_v27 = vpop.f32.mrb[13].mxu1 }
 0x812   :  { %v3414_v28 = vmul.f32 %v4624_v15, %v3393_v27 }
 0x813   :  { %v3424_v31 = vmul.f32 %v3415_v18, %v3415_v18 }
 0x814   :  { %v3423_v45 = vmul.f32 %v3414_v28, %v3414_v28  ;;  %v4023_v19 = vpack.c.bf16 %v3415_v18, %v3414_v28 }
 0x816   :  { %v3427_v39 = vadd.f32 %v3424_v31, %v3423_v45  ;;  %4024 = vmatpush3.bf16.msra.mxu1 %v4023_v19 }
 0x817   :  { %4025 = vmatprep.subr.bf16.mxu1 %v4732_v4 }
 0x818   :  { %v4010_v12 = vpop.f32.mrb[14].mxu1 }
 0x819   :  { %v3417_v20 = vmul.f32 %v4624_v15, %v4010_v12  ;;  %v3403_v43 = vpop.f32.mrb[15].mxu1 }
 0x81a   :  { %v3416_v21 = vmul.f32 %v4624_v15, %v3403_v43 }
 0x81b   :  { %v3426_v44 = vmul.f32 %v3417_v20, %v3417_v20 }
 0x81c   :  { %v3425_v53 = vmul.f32 %v3416_v21, %v3416_v21  ;;  %v4026_v22 = vpack.c.bf16 %v3417_v20, %v3416_v21 }
 0x81e   :  { %v3428_v23 = vadd.f32 %v3427_v39, %v3425_v53  ;;  %4027 = vmatpush3.bf16.msra.mxu1 %v4026_v22 }
 0x820   :  { %v3429_v24 = vadd.f32 %v3428_v23, %v3426_v44 }
 0x821   :  { %4020 = vmatmul.mubr.msk.f32.vlgmr.msra.gmra.mrb[16].mxu1 %vm3419_vm2, %v3264_v63 }
 0x822   :  { %v3430_v25 = vrot.slane %v3429_v24, 4 }
 0x824   :  { %v3431_v26 = vadd.f32 %v3430_v25, %v3429_v24 }
 0x826   :  { %v3432_v29 = vrot.slane %v3431_v26, 2 }
 0x828   :  { %v3433_v30 = vadd.f32 %v3432_v29, %v3431_v26 }
 0x82a   :  { %v3434_v35 = vrot.slane %v3433_v30, 1 }
 0x82c   :  { %v3435_v16 = vadd.f32 %v3434_v35, %v3433_v30 }
 0x82e   :  { %v3509_v40 = vadd.f32 %v3435_v16, %v3422_v51 }
 0x8f4   :  { %v3505_v32 = vpop.f32.mrb[16].mxu1 }
 0x8f5   :  { %v3510_v33 = vmul.f32 2.0, %v3505_v32  ;;  %v4021_v41 = vpop.f32.mrb[17].mxu1 }
 0x8f7   :  { %v3511_v34 = vsub.f32 %v3509_v40, %v3510_v33 }
 0x8f9   :  { %v3512_v36 = vmax.f32 %v3511_v34, 0.0 }
 0x8fb   :  { %4625 = vrsqrt.f32 %v3512_v36  ;;  %vm3515_vm4 = vcmp.eq.f32.partialorder %v3512_v36, inf  ;;  %v3518_v55 = vand.u32 2147483648, %v3512_v36  ;;  %vm3517_vm5 = vcmp.eq.f32.partialorder %v3512_v36, 0.0 }
 0x905   :  { %v4626_v52 = vpop.eup %4625 }
 0x906   :  { %v3514_v37 = vmul.f32 %v4626_v52, %v3512_v36 }
 0x908   :  { %v3516_v42 = vsel %vm3515_vm4, %v3512_v36, %v3514_v37 }
 0x909   :  { %v3519_v46 = vsel %vm3517_vm5, %v3518_v55, %v3516_v42 }
 0x90a   :  { %v3520_v59 = vsub.f32 0.0, %v3519_v46 }
 0x90c   :  { %3521 = vst [vmem:[#allocation8] sm:$0xff] %v3520_v59 }
 0x90d   :  { %4704 = shalt.err (!%p4701_p0)
}
 0x90e   :  { %s4705_s17 = scalar_lea.hbm %s5081_s8, 128 }
 0x90f   :  { %p4706_p1 = scmp.ne.s32.totalorder %s5081_s8, %s4705_s17  ;;  %p4709_p2 = scmp.lt.u32.totalorder %s4705_s17, %s5081_s8 }
 0x911   :  { %p4711_p3 = pnand %p4709_p2, %p4706_p1 }
 0x913   :  { %4714 = shalt.err (!%p4711_p3)
}
 0x914   :  { %3531 = dma.vmem_to_hbm [thread:$0]  %s3529_s20, 128, %s5081_s8, [#allocation4]  }
 0x915   :  { %4719 = dma.done.wait [#allocation4], 128  }
 0x916   :  { %4720 = vsyncadd [#allocation4], 4294967168 }
 0x917   :  { %3535 = vsyncpa [#allocation3], 1 }
 0x918   :  { %3536 = vsyncpa [#allocation6], 1 }
 0x919   :  { %3537 = vsyncpa [#allocation4], 1 }

</bundles_post_ra>
